<compile_context>
chip_gen: v5e
topology: v5e:2x2
jax: 0.10.0
libtpu: 0.0.40
codegen_flags: <defaults>
</compile_context>

<pallas_src>
import math

import jax
import jax.numpy as jnp
from jax.experimental import pallas as pl
from jax.experimental.pallas import tpu as pltpu

D_MODEL = 32
N_HEAD = 4
D_HEAD = D_MODEL // N_HEAD
D_FFN = 64
NUM_LAYERS = 2
LN_EPS = 1e-5          # per-layer LayerNorm eps (torch default)
FINAL_LN_EPS = 1e-6    # SpeechBrain TransformerEncoder final norm eps
LANE = 128

# slots inside the per-layer head-weight slab; each slot is N_HEAD rows of (D_MODEL, D_HEAD)
SLOT_WQ, SLOT_WK, SLOT_WV, SLOT_WOT, SLOT_BQ, SLOT_BK, SLOT_BV = range(7)
N_SLOTS = 7

# rows of the packed per-layer (8, 128) bias/LN slab
ROW_BO, ROW_B1, ROW_B2, ROW_LN1G, ROW_LN1B, ROW_LN2G, ROW_LN2B = range(7)


def _layer_norm(x, g, b, eps):
    mean = jnp.mean(x, axis=-1, keepdims=True)
    var = jnp.mean((x - mean) ** 2, axis=-1, keepdims=True)
    return (x - mean) * jax.lax.rsqrt(var + eps) * g + b


def make_block_kernel(seq_len):
    """Fused kernel for one batch element: NUM_LAYERS encoder layers + final LayerNorm."""

    def block_kernel(x_ref, w_ref, ffn_ref, vec_ref, o_ref):
        x = x_ref[...].astype(jnp.float32)                       # (L, D)

        for l in range(NUM_LAYERS):                              # static unroll (2 layers)
            wl = w_ref[l]                                        # (N_SLOTS*H, D, d_head)

            def slot(s):                                         # free leading-dim view
                return wl[s * N_HEAD:(s + 1) * N_HEAD]           # (H, D, d_head)

            wq, wk, wv = slot(SLOT_WQ), slot(SLOT_WK), slot(SLOT_WV)   # wq already *1/sqrt(d)
            woT = slot(SLOT_WOT)                                 # woT[h, d, k] = Wo[h*dh+k, d]
            bq = slot(SLOT_BQ)[:, 0:1, :]                        # (H, 1, d_head), pre-scaled
            bk = slot(SLOT_BK)[:, 0:1, :]
            bv = slot(SLOT_BV)[:, 0:1, :]

            vec = vec_ref[l]                                     # (8, 128) biases / LN params
            b_o = vec[ROW_BO:ROW_BO + 1, 0:D_MODEL]
            b_1 = vec[ROW_B1:ROW_B1 + 1, 0:D_FFN]
            b_2 = vec[ROW_B2:ROW_B2 + 1, 0:D_MODEL]
            ln1g = vec[ROW_LN1G:ROW_LN1G + 1, 0:D_MODEL]
            ln1b = vec[ROW_LN1B:ROW_LN1B + 1, 0:D_MODEL]
            ln2g = vec[ROW_LN2G:ROW_LN2G + 1, 0:D_MODEL]
            ln2b = vec[ROW_LN2B:ROW_LN2B + 1, 0:D_MODEL]

            ffn = ffn_ref[l]                                     # (D + D_FFN, D_FFN)
            w1 = ffn[0:D_MODEL, :]                               # (D, D_FFN)
            w2 = ffn[D_MODEL:D_MODEL + D_FFN, 0:D_MODEL]         # (D_FFN, D)

            # ---- multi-head attention: heads batched through the MXU, no slicing ----
            xb = jnp.broadcast_to(x, (N_HEAD, seq_len, D_MODEL))                    # (H,L,D)
            q = jnp.einsum('hld,hdk->hlk', xb, wq, preferred_element_type=jnp.float32) + bq
            k = jnp.einsum('hld,hdk->hlk', xb, wk, preferred_element_type=jnp.float32) + bk
            v = jnp.einsum('hld,hdk->hlk', xb, wv, preferred_element_type=jnp.float32) + bv

            s = jnp.einsum('hlk,hmk->hlm', q, k, preferred_element_type=jnp.float32)  # (H,L,L)
            s = s - jnp.max(s, axis=-1, keepdims=True)
            e = jnp.exp(s)
            p = e * pl.reciprocal(jnp.sum(e, axis=-1, keepdims=True), approx=True)
            ctx = jnp.einsum('hlm,hmk->hlk', p, v, preferred_element_type=jnp.float32)
            contrib = jnp.einsum('hlk,hdk->hld', ctx, woT,
                                 preferred_element_type=jnp.float32)                 # (H,L,D)
            attn = jnp.sum(contrib, axis=0) + b_o                                    # (L,D)

            # ---- residual + post-norm (normalize_before=False), FFN, post-norm ----
            x = _layer_norm(x + attn, ln1g, ln1b, LN_EPS)
            h1 = jnp.maximum(jnp.dot(x, w1, preferred_element_type=jnp.float32) + b_1, 0.0)
            h2 = jnp.dot(h1, w2, preferred_element_type=jnp.float32) + b_2
            x = _layer_norm(x + h2, ln2g, ln2b, LN_EPS)

        fin = vec_ref[NUM_LAYERS]                                # (8, 128): final LN params
        fg = fin[0:1, 0:D_MODEL]
        fb = fin[1:2, 0:D_MODEL]
        o_ref[...] = _layer_norm(x, fg, fb, FINAL_LN_EPS).astype(o_ref.dtype)

    return block_kernel


# ---------------- weight packing (wrapper-side, pure JAX) ----------------

def _pad_row(v):
    v = jnp.asarray(v, jnp.float32).reshape(-1)
    return jnp.pad(v, (0, LANE - v.shape[0]))


def _heads_of_cols(w):
    # (D, D) -> (H, D, d_head): head h gets columns [h*dh : (h+1)*dh]
    return jnp.stack([w[:, h * D_HEAD:(h + 1) * D_HEAD] for h in range(N_HEAD)])


def _heads_of_rows_T(w):
    # (D, D) -> (H, D, d_head): head h gets rows [h*dh:(h+1)*dh], stored transposed
    return jnp.stack([w[h * D_HEAD:(h + 1) * D_HEAD, :].T for h in range(N_HEAD)])


def _bias_slot(b):
    # (D,) -> (H, D, d_head) with the bias stored in row 0 of the D axis
    bh = jnp.asarray(b, jnp.float32).reshape(N_HEAD, D_HEAD)
    slot = jnp.zeros((N_HEAD, D_MODEL, D_HEAD), jnp.float32)
    return slot.at[:, 0, :].set(bh)


def pack_params(params):
    scale = 1.0 / math.sqrt(D_HEAD)
    w_all, ffn_all, vec_all = [], [], []
    for p in params['layers']:
        slots = jnp.concatenate([
            _heads_of_cols(p['wq']) * scale,       # scale folded into Wq at pack time
            _heads_of_cols(p['wk']),
            _heads_of_cols(p['wv']),
            _heads_of_rows_T(p['wo']),
            _bias_slot(p['bq'] * scale),           # and into bq
            _bias_slot(p['bk']),
            _bias_slot(p['bv']),
        ], axis=0)                                 # (N_SLOTS*H, D, d_head)
        w_all.append(slots)

        f = jnp.zeros((D_MODEL + D_FFN, D_FFN), jnp.float32)
        f = f.at[0:D_MODEL, :].set(p['w1'])
        f = f.at[D_MODEL:, 0:D_MODEL].set(p['w2'])
        ffn_all.append(f)

        rows = [p['bo'], p['b1'], p['b2'],
                p['ln1_g'], p['ln1_b'], p['ln2_g'], p['ln2_b'],
                jnp.zeros((1,), jnp.float32)]
        vec_all.append(jnp.stack([_pad_row(r) for r in rows]))   # (8, 128)

    fin = jnp.stack([_pad_row(params['final_g']), _pad_row(params['final_b'])]
                    + [_pad_row(jnp.zeros((1,), jnp.float32))] * 6)      # (8, 128)
    vec = jnp.stack(vec_all + [fin])               # (NUM_LAYERS+1, 8, 128)
    return jnp.stack(w_all), jnp.stack(ffn_all), vec


def sb_transformer_block(x, params):
    B, L, D = x.shape
    assert D == D_MODEL
    w_all, ffn, vec = pack_params(params)

    flops = NUM_LAYERS * B * (
        3 * N_HEAD * 2 * L * D * D_HEAD            # q/k/v projections
        + 2 * N_HEAD * 2 * L * L * D_HEAD          # scores + context
        + N_HEAD * 2 * L * D_HEAD * D              # output projection
        + 2 * 2 * L * D * D_FFN)                   # FFN
    transcendentals = (NUM_LAYERS * B * N_HEAD * L * L       # exp
                       + (2 * NUM_LAYERS + 1) * B * L        # rsqrt (LayerNorms)
                       + NUM_LAYERS * B * N_HEAD * L)        # approx reciprocal
    bytes_accessed = int((2 * B * L * D + w_all.size + ffn.size + vec.size) * 4)

    out = pl.pallas_call(
        make_block_kernel(L),
        out_shape=jax.ShapeDtypeStruct((B, L, D), x.dtype),
        grid=(B,),
        in_specs=[
            pl.BlockSpec((None, L, D), lambda b: (b, 0, 0)),          # per-batch token block
            pl.BlockSpec(w_all.shape, lambda b: (0, 0, 0, 0)),        # resident weight slab
            pl.BlockSpec(ffn.shape, lambda b: (0, 0, 0)),             # resident FFN slab
            pl.BlockSpec(vec.shape, lambda b: (0, 0, 0)),             # resident bias/LN slab
        ],
        out_specs=pl.BlockSpec((None, L, D), lambda b: (b, 0, 0)),
        compiler_params=pltpu.CompilerParams(dimension_semantics=("parallel",)),
        cost_estimate=pl.CostEstimate(flops=int(flops),
                                      transcendentals=int(transcendentals),
                                      bytes_accessed=bytes_accessed),
    )(x, w_all, ffn, vec)
    return out


# ---------------- deterministic parameter init (synthetic weights) ----------------

def init_params(key):
    layers = []
    s = 0.05
    for _ in range(NUM_LAYERS):
        key, kq, kk, kv, ko, k1, k2, kb = jax.random.split(key, 8)
        bk = jax.random.split(kb, 10)
        layers.append(dict(
            wq=s * jax.random.normal(kq, (D_MODEL, D_MODEL), jnp.float32),
            wk=s * jax.random.normal(kk, (D_MODEL, D_MODEL), jnp.float32),
            wv=s * jax.random.normal(kv, (D_MODEL, D_MODEL), jnp.float32),
            wo=s * jax.random.normal(ko, (D_MODEL, D_MODEL), jnp.float32),
            bq=0.1 * jax.random.normal(bk[0], (D_MODEL,), jnp.float32),
            bk=0.1 * jax.random.normal(bk[1], (D_MODEL,), jnp.float32),
            bv=0.1 * jax.random.normal(bk[2], (D_MODEL,), jnp.float32),
            bo=0.1 * jax.random.normal(bk[3], (D_MODEL,), jnp.float32),
            ln1_g=1.0 + 0.1 * jax.random.normal(bk[4], (D_MODEL,), jnp.float32),
            ln1_b=0.05 * jax.random.normal(bk[5], (D_MODEL,), jnp.float32),
            ln2_g=1.0 + 0.1 * jax.random.normal(bk[6], (D_MODEL,), jnp.float32),
            ln2_b=0.05 * jax.random.normal(bk[7], (D_MODEL,), jnp.float32),
            w1=s * jax.random.normal(k1, (D_MODEL, D_FFN), jnp.float32),
            b1=0.1 * jax.random.normal(bk[8], (D_FFN,), jnp.float32),
            w2=s * jax.random.normal(k2, (D_FFN, D_MODEL), jnp.float32),
            b2=0.1 * jax.random.normal(bk[9], (D_MODEL,), jnp.float32),
        ))
    key, kg, kb2 = jax.random.split(key, 3)
    return dict(layers=layers,
                final_g=1.0 + 0.1 * jax.random.normal(kg, (D_MODEL,), jnp.float32),
                final_b=0.05 * jax.random.normal(kb2, (D_MODEL,), jnp.float32))


# ---------------- pure-JAX reference for correctness check ----------------

def _ref_layer(x, p):  # x: (L, D)
    H, hd = N_HEAD, D_HEAD
    q = x @ p['wq'] + p['bq']
    k = x @ p['wk'] + p['bk']
    v = x @ p['wv'] + p['bv']
    heads = []
    for h in range(H):
        qh, kh, vh = (t[:, h * hd:(h + 1) * hd] for t in (q, k, v))
        s = (qh @ kh.T) / jnp.sqrt(jnp.float32(hd))
        a = jax.nn.softmax(s, axis=-1)
        heads.append(a @ vh)
    attn = jnp.concatenate(heads, axis=-1) @ p['wo'] + p['bo']
    x1 = _layer_norm(x + attn, p['ln1_g'], p['ln1_b'], LN_EPS)
    f = jnp.maximum(x1 @ p['w1'] + p['b1'], 0.0) @ p['w2'] + p['b2']
    return _layer_norm(x1 + f, p['ln2_g'], p['ln2_b'], LN_EPS)


def reference(x, params):
    for p in params['layers']:
        x = jax.vmap(lambda xb: _ref_layer(xb, p))(x)
    return jax.vmap(lambda xb: _layer_norm(xb, params['final_g'],
                                           params['final_b'], FINAL_LN_EPS))(x)


if __name__ == "__main__":
    key = jax.random.PRNGKey(0)
    kx, kp = jax.random.split(key)
    B, L = 2, 8
    x = jax.random.normal(kx, (B, L, D_MODEL), dtype=jnp.float32)
    params = init_params(kp)

    out = jax.block_until_ready(sb_transformer_block(x, params))
    ref = reference(x, params)

    assert out.shape == (B, L, D_MODEL)
    assert bool(jnp.all(jnp.isfinite(out)))
    # tolerance slightly relaxed: softmax denominator uses EUP approx reciprocal
    assert bool(jnp.allclose(out, ref, atol=2e-3, rtol=2e-3)), "mismatch vs JAX reference"
    print("KERNEL_OK")
</pallas_src>

<mosaic_0001>
module attributes {stable_mosaic.version = 11 : i64} {
  func.func @block_kernel(%arg0: i32, %arg1: memref<1x8x32xf32, #tpu.memory_space<vmem>>, %arg2: memref<2x28x32x8xf32, #tpu.memory_space<vmem>>, %arg3: memref<2x96x64xf32, #tpu.memory_space<vmem>>, %arg4: memref<3x8x128xf32, #tpu.memory_space<vmem>>, %arg5: memref<1x8x32xf32, #tpu.memory_space<vmem>>) attributes {dimension_semantics = [#tpu.dimension_semantics<parallel>], iteration_bounds = array<i64: 2>, scalar_prefetch = 0 : i64, scratch_operands = 0 : i64, tpu.core_type = #tpu.core_type<tc>, window_params = [{transform_indices = @transform_0, window_bounds = array<i64: 1, 8, 32>}, {pipeline_mode = #tpu.pipeline_mode<synchronous>, transform_indices = @transform_1, window_bounds = array<i64: 2, 28, 32, 8>}, {pipeline_mode = #tpu.pipeline_mode<synchronous>, transform_indices = @transform_2, window_bounds = array<i64: 2, 96, 64>}, {pipeline_mode = #tpu.pipeline_mode<synchronous>, transform_indices = @transform_3, window_bounds = array<i64: 3, 8, 128>}, {transform_indices = @transform_4, window_bounds = array<i64: 1, 8, 32>}]} {
    %c0 = arith.constant 0 : index
    %c0_0 = arith.constant 0 : index
    %c0_1 = arith.constant 0 : index
    %0 = vector.load %arg1[%c0, %c0_0, %c0_1] : memref<1x8x32xf32, #tpu.memory_space<vmem>>, vector<1x8x32xf32>
    %1 = vector.shape_cast %0 : vector<1x8x32xf32> to vector<8x32xf32>
    %c0_2 = arith.constant 0 : index
    %c0_3 = arith.constant 0 : index
    %c0_4 = arith.constant 0 : index
    %c0_5 = arith.constant 0 : index
    %2 = vector.load %arg2[%c0_2, %c0_3, %c0_4, %c0_5] : memref<2x28x32x8xf32, #tpu.memory_space<vmem>>, vector<1x28x32x8xf32>
    %3 = vector.shape_cast %2 : vector<1x28x32x8xf32> to vector<28x32x8xf32>
    %4 = vector.extract_strided_slice %3 {offsets = [0, 0, 0], sizes = [4, 32, 8], strides = [1, 1, 1]} : vector<28x32x8xf32> to vector<4x32x8xf32>
    %5 = vector.extract_strided_slice %3 {offsets = [4, 0, 0], sizes = [4, 32, 8], strides = [1, 1, 1]} : vector<28x32x8xf32> to vector<4x32x8xf32>
    %6 = vector.extract_strided_slice %3 {offsets = [8, 0, 0], sizes = [4, 32, 8], strides = [1, 1, 1]} : vector<28x32x8xf32> to vector<4x32x8xf32>
    %7 = vector.extract_strided_slice %3 {offsets = [12, 0, 0], sizes = [4, 32, 8], strides = [1, 1, 1]} : vector<28x32x8xf32> to vector<4x32x8xf32>
    %8 = vector.extract_strided_slice %3 {offsets = [16, 0, 0], sizes = [4, 32, 8], strides = [1, 1, 1]} : vector<28x32x8xf32> to vector<4x32x8xf32>
    %9 = vector.extract_strided_slice %8 {offsets = [0, 0, 0], sizes = [4, 1, 8], strides = [1, 1, 1]} : vector<4x32x8xf32> to vector<4x1x8xf32>
    %10 = vector.extract_strided_slice %3 {offsets = [20, 0, 0], sizes = [4, 32, 8], strides = [1, 1, 1]} : vector<28x32x8xf32> to vector<4x32x8xf32>
    %11 = vector.extract_strided_slice %10 {offsets = [0, 0, 0], sizes = [4, 1, 8], strides = [1, 1, 1]} : vector<4x32x8xf32> to vector<4x1x8xf32>
    %12 = vector.extract_strided_slice %3 {offsets = [24, 0, 0], sizes = [4, 32, 8], strides = [1, 1, 1]} : vector<28x32x8xf32> to vector<4x32x8xf32>
    %13 = vector.extract_strided_slice %12 {offsets = [0, 0, 0], sizes = [4, 1, 8], strides = [1, 1, 1]} : vector<4x32x8xf32> to vector<4x1x8xf32>
    %c0_6 = arith.constant 0 : index
    %c0_7 = arith.constant 0 : index
    %c0_8 = arith.constant 0 : index
    %14 = vector.load %arg4[%c0_6, %c0_7, %c0_8] : memref<3x8x128xf32, #tpu.memory_space<vmem>>, vector<1x8x128xf32>
    %15 = vector.shape_cast %14 : vector<1x8x128xf32> to vector<8x128xf32>
    %16 = vector.extract_strided_slice %15 {offsets = [0, 0], sizes = [1, 32], strides = [1, 1]} : vector<8x128xf32> to vector<1x32xf32>
    %17 = vector.extract_strided_slice %15 {offsets = [1, 0], sizes = [1, 64], strides = [1, 1]} : vector<8x128xf32> to vector<1x64xf32>
    %18 = vector.extract_strided_slice %15 {offsets = [2, 0], sizes = [1, 32], strides = [1, 1]} : vector<8x128xf32> to vector<1x32xf32>
    %19 = vector.extract_strided_slice %15 {offsets = [3, 0], sizes = [1, 32], strides = [1, 1]} : vector<8x128xf32> to vector<1x32xf32>
    %20 = vector.extract_strided_slice %15 {offsets = [4, 0], sizes = [1, 32], strides = [1, 1]} : vector<8x128xf32> to vector<1x32xf32>
    %21 = vector.extract_strided_slice %15 {offsets = [5, 0], sizes = [1, 32], strides = [1, 1]} : vector<8x128xf32> to vector<1x32xf32>
    %22 = vector.extract_strided_slice %15 {offsets = [6, 0], sizes = [1, 32], strides = [1, 1]} : vector<8x128xf32> to vector<1x32xf32>
    %c0_9 = arith.constant 0 : index
    %c0_10 = arith.constant 0 : index
    %c0_11 = arith.constant 0 : index
    %23 = vector.load %arg3[%c0_9, %c0_10, %c0_11] : memref<2x96x64xf32, #tpu.memory_space<vmem>>, vector<1x96x64xf32>
    %24 = vector.shape_cast %23 : vector<1x96x64xf32> to vector<96x64xf32>
    %25 = vector.extract_strided_slice %24 {offsets = [0, 0], sizes = [32, 64], strides = [1, 1]} : vector<96x64xf32> to vector<32x64xf32>
    %26 = vector.extract_strided_slice %24 {offsets = [32, 0], sizes = [64, 32], strides = [1, 1]} : vector<96x64xf32> to vector<64x32xf32>
    %27 = vector.shape_cast %1 : vector<8x32xf32> to vector<1x8x32xf32>
    %28 = vector.broadcast %27 : vector<1x8x32xf32> to vector<4x8x32xf32>
    "tpu.trace_start"() <{level = 10 : i32, message = "hld,hdk->hlk"}> : () -> ()
    %cst = arith.constant dense<0.000000e+00> : vector<4x8x8xf32>
    %29 = tpu.matmul %28, %4, %cst {dimension_numbers = #tpu.dot_dimension_numbers<[2], [1], [1], [2], [0, 0, 0, 1, 1, 2], [0], [0]>} : vector<4x8x32xf32>, vector<4x32x8xf32>, vector<4x8x8xf32> -> vector<4x8x8xf32>
    "tpu.trace_stop"() : () -> ()
    %30 = vector.broadcast %9 : vector<4x1x8xf32> to vector<4x8x8xf32>
    %31 = arith.addf %29, %30 : vector<4x8x8xf32>
    "tpu.trace_start"() <{level = 10 : i32, message = "hld,hdk->hlk"}> : () -> ()
    %cst_12 = arith.constant dense<0.000000e+00> : vector<4x8x8xf32>
    %32 = tpu.matmul %28, %5, %cst_12 {dimension_numbers = #tpu.dot_dimension_numbers<[2], [1], [1], [2], [0, 0, 0, 1, 1, 2], [0], [0]>} : vector<4x8x32xf32>, vector<4x32x8xf32>, vector<4x8x8xf32> -> vector<4x8x8xf32>
    "tpu.trace_stop"() : () -> ()
    %33 = vector.broadcast %11 : vector<4x1x8xf32> to vector<4x8x8xf32>
    %34 = arith.addf %32, %33 : vector<4x8x8xf32>
    "tpu.trace_start"() <{level = 10 : i32, message = "hld,hdk->hlk"}> : () -> ()
    %cst_13 = arith.constant dense<0.000000e+00> : vector<4x8x8xf32>
    %35 = tpu.matmul %28, %6, %cst_13 {dimension_numbers = #tpu.dot_dimension_numbers<[2], [1], [1], [2], [0, 0, 0, 1, 1, 2], [0], [0]>} : vector<4x8x32xf32>, vector<4x32x8xf32>, vector<4x8x8xf32> -> vector<4x8x8xf32>
    "tpu.trace_stop"() : () -> ()
    %36 = vector.broadcast %13 : vector<4x1x8xf32> to vector<4x8x8xf32>
    %37 = arith.addf %35, %36 : vector<4x8x8xf32>
    "tpu.trace_start"() <{level = 10 : i32, message = "hlk,hmk->hlm"}> : () -> ()
    %cst_14 = arith.constant dense<0.000000e+00> : vector<4x8x8xf32>
    %38 = tpu.matmul %31, %34, %cst_14 {dimension_numbers = #tpu.dot_dimension_numbers<[2], [2], [1], [1], [0, 0, 0, 1, 1, 1], [0], [0]>} : vector<4x8x8xf32>, vector<4x8x8xf32>, vector<4x8x8xf32> -> vector<4x8x8xf32>
    "tpu.trace_stop"() : () -> ()
    %cst_15 = arith.constant dense<0xFF800000> : vector<4x8xf32>
    %39 = vector.multi_reduction <maximumf>, %38, %cst_15 [2] : vector<4x8x8xf32> to vector<4x8xf32>
    %40 = vector.shape_cast %39 : vector<4x8xf32> to vector<4x8x1xf32>
    %41 = vector.broadcast %40 : vector<4x8x1xf32> to vector<4x8x8xf32>
    %42 = arith.subf %38, %41 : vector<4x8x8xf32>
    %43 = math.exp %42 : vector<4x8x8xf32>
    %cst_16 = arith.constant dense<0.000000e+00> : vector<4x8xf32>
    %44 = vector.multi_reduction <add>, %43, %cst_16 [2] : vector<4x8x8xf32> to vector<4x8xf32>
    %45 = vector.shape_cast %44 : vector<4x8xf32> to vector<4x8x1xf32>
    %46 = tpu.reciprocal %45 {approx = true} : vector<4x8x1xf32> -> vector<4x8x1xf32>
    %47 = vector.broadcast %46 : vector<4x8x1xf32> to vector<4x8x8xf32>
    %48 = arith.mulf %43, %47 : vector<4x8x8xf32>
    "tpu.trace_start"() <{level = 10 : i32, message = "hlm,hmk->hlk"}> : () -> ()
    %cst_17 = arith.constant dense<0.000000e+00> : vector<4x8x8xf32>
    %49 = tpu.matmul %48, %37, %cst_17 {dimension_numbers = #tpu.dot_dimension_numbers<[2], [1], [1], [2], [0, 0, 0, 1, 1, 2], [0], [0]>} : vector<4x8x8xf32>, vector<4x8x8xf32>, vector<4x8x8xf32> -> vector<4x8x8xf32>
    "tpu.trace_stop"() : () -> ()
    "tpu.trace_start"() <{level = 10 : i32, message = "hlk,hdk->hld"}> : () -> ()
    %cst_18 = arith.constant dense<0.000000e+00> : vector<4x8x32xf32>
    %50 = tpu.matmul %49, %7, %cst_18 {dimension_numbers = #tpu.dot_dimension_numbers<[2], [2], [1], [1], [0, 0, 0, 1, 1, 1], [0], [0]>} : vector<4x8x8xf32>, vector<4x32x8xf32>, vector<4x8x32xf32> -> vector<4x8x32xf32>
    "tpu.trace_stop"() : () -> ()
    %cst_19 = arith.constant dense<0.000000e+00> : vector<8x32xf32>
    %51 = vector.multi_reduction <add>, %50, %cst_19 [0] : vector<4x8x32xf32> to vector<8x32xf32>
    %52 = vector.broadcast %16 : vector<1x32xf32> to vector<8x32xf32>
    %53 = arith.addf %51, %52 : vector<8x32xf32>
    %54 = arith.addf %1, %53 : vector<8x32xf32>
    %cst_20 = arith.constant dense<0.000000e+00> : vector<8xf32>
    %55 = vector.multi_reduction <add>, %54, %cst_20 [1] : vector<8x32xf32> to vector<8xf32>
    %56 = vector.shape_cast %55 : vector<8xf32> to vector<8x1xf32>
    %cst_21 = arith.constant 3.200000e+01 : f32
    %57 = vector.broadcast %cst_21 : f32 to vector<8x1xf32>
    %58 = arith.divf %56, %57 : vector<8x1xf32>
    %59 = vector.broadcast %58 : vector<8x1xf32> to vector<8x32xf32>
    %60 = arith.subf %54, %59 : vector<8x32xf32>
    %61 = arith.mulf %60, %60 : vector<8x32xf32>
    %cst_22 = arith.constant dense<0.000000e+00> : vector<8xf32>
    %62 = vector.multi_reduction <add>, %61, %cst_22 [1] : vector<8x32xf32> to vector<8xf32>
    %63 = vector.shape_cast %62 : vector<8xf32> to vector<8x1xf32>
    %cst_23 = arith.constant 3.200000e+01 : f32
    %64 = vector.broadcast %cst_23 : f32 to vector<8x1xf32>
    %65 = arith.divf %63, %64 : vector<8x1xf32>
    %66 = vector.broadcast %58 : vector<8x1xf32> to vector<8x32xf32>
    %67 = arith.subf %54, %66 : vector<8x32xf32>
    %cst_24 = arith.constant 9.99999974E-6 : f32
    %68 = vector.broadcast %cst_24 : f32 to vector<8x1xf32>
    %69 = arith.addf %65, %68 : vector<8x1xf32>
    %70 = math.rsqrt %69 : vector<8x1xf32>
    %71 = vector.broadcast %70 : vector<8x1xf32> to vector<8x32xf32>
    %72 = arith.mulf %67, %71 : vector<8x32xf32>
    %73 = vector.broadcast %19 : vector<1x32xf32> to vector<8x32xf32>
    %74 = arith.mulf %72, %73 : vector<8x32xf32>
    %75 = vector.broadcast %20 : vector<1x32xf32> to vector<8x32xf32>
    %76 = arith.addf %74, %75 : vector<8x32xf32>
    %cst_25 = arith.constant dense<0.000000e+00> : vector<8x64xf32>
    %77 = tpu.matmul %76, %25, %cst_25 {dimension_numbers = #tpu.dot_dimension_numbers<[1], [0], [0], [1], [0, 0, 1, 1], [], []>} : vector<8x32xf32>, vector<32x64xf32>, vector<8x64xf32> -> vector<8x64xf32>
    %78 = vector.broadcast %17 : vector<1x64xf32> to vector<8x64xf32>
    %79 = arith.addf %77, %78 : vector<8x64xf32>
    %cst_26 = arith.constant 0.000000e+00 : f32
    %80 = vector.broadcast %cst_26 : f32 to vector<8x64xf32>
    %81 = arith.maximumf %79, %80 : vector<8x64xf32>
    %cst_27 = arith.constant dense<0.000000e+00> : vector<8x32xf32>
    %82 = tpu.matmul %81, %26, %cst_27 {dimension_numbers = #tpu.dot_dimension_numbers<[1], [0], [0], [1], [0, 0, 1, 1], [], []>} : vector<8x64xf32>, vector<64x32xf32>, vector<8x32xf32> -> vector<8x32xf32>
    %83 = vector.broadcast %18 : vector<1x32xf32> to vector<8x32xf32>
    %84 = arith.addf %82, %83 : vector<8x32xf32>
    %85 = arith.addf %76, %84 : vector<8x32xf32>
    %cst_28 = arith.constant dense<0.000000e+00> : vector<8xf32>
    %86 = vector.multi_reduction <add>, %85, %cst_28 [1] : vector<8x32xf32> to vector<8xf32>
    %87 = vector.shape_cast %86 : vector<8xf32> to vector<8x1xf32>
    %cst_29 = arith.constant 3.200000e+01 : f32
    %88 = vector.broadcast %cst_29 : f32 to vector<8x1xf32>
    %89 = arith.divf %87, %88 : vector<8x1xf32>
    %90 = vector.broadcast %89 : vector<8x1xf32> to vector<8x32xf32>
    %91 = arith.subf %85, %90 : vector<8x32xf32>
    %92 = arith.mulf %91, %91 : vector<8x32xf32>
    %cst_30 = arith.constant dense<0.000000e+00> : vector<8xf32>
    %93 = vector.multi_reduction <add>, %92, %cst_30 [1] : vector<8x32xf32> to vector<8xf32>
    %94 = vector.shape_cast %93 : vector<8xf32> to vector<8x1xf32>
    %cst_31 = arith.constant 3.200000e+01 : f32
    %95 = vector.broadcast %cst_31 : f32 to vector<8x1xf32>
    %96 = arith.divf %94, %95 : vector<8x1xf32>
    %97 = vector.broadcast %89 : vector<8x1xf32> to vector<8x32xf32>
    %98 = arith.subf %85, %97 : vector<8x32xf32>
    %cst_32 = arith.constant 9.99999974E-6 : f32
    %99 = vector.broadcast %cst_32 : f32 to vector<8x1xf32>
    %100 = arith.addf %96, %99 : vector<8x1xf32>
    %101 = math.rsqrt %100 : vector<8x1xf32>
    %102 = vector.broadcast %101 : vector<8x1xf32> to vector<8x32xf32>
    %103 = arith.mulf %98, %102 : vector<8x32xf32>
    %104 = vector.broadcast %21 : vector<1x32xf32> to vector<8x32xf32>
    %105 = arith.mulf %103, %104 : vector<8x32xf32>
    %106 = vector.broadcast %22 : vector<1x32xf32> to vector<8x32xf32>
    %107 = arith.addf %105, %106 : vector<8x32xf32>
    %c1 = arith.constant 1 : index
    %c0_33 = arith.constant 0 : index
    %c0_34 = arith.constant 0 : index
    %c0_35 = arith.constant 0 : index
    %108 = vector.load %arg2[%c1, %c0_33, %c0_34, %c0_35] : memref<2x28x32x8xf32, #tpu.memory_space<vmem>>, vector<1x28x32x8xf32>
    %109 = vector.shape_cast %108 : vector<1x28x32x8xf32> to vector<28x32x8xf32>
    %110 = vector.extract_strided_slice %109 {offsets = [0, 0, 0], sizes = [4, 32, 8], strides = [1, 1, 1]} : vector<28x32x8xf32> to vector<4x32x8xf32>
    %111 = vector.extract_strided_slice %109 {offsets = [4, 0, 0], sizes = [4, 32, 8], strides = [1, 1, 1]} : vector<28x32x8xf32> to vector<4x32x8xf32>
    %112 = vector.extract_strided_slice %109 {offsets = [8, 0, 0], sizes = [4, 32, 8], strides = [1, 1, 1]} : vector<28x32x8xf32> to vector<4x32x8xf32>
    %113 = vector.extract_strided_slice %109 {offsets = [12, 0, 0], sizes = [4, 32, 8], strides = [1, 1, 1]} : vector<28x32x8xf32> to vector<4x32x8xf32>
    %114 = vector.extract_strided_slice %109 {offsets = [16, 0, 0], sizes = [4, 32, 8], strides = [1, 1, 1]} : vector<28x32x8xf32> to vector<4x32x8xf32>
    %115 = vector.extract_strided_slice %114 {offsets = [0, 0, 0], sizes = [4, 1, 8], strides = [1, 1, 1]} : vector<4x32x8xf32> to vector<4x1x8xf32>
    %116 = vector.extract_strided_slice %109 {offsets = [20, 0, 0], sizes = [4, 32, 8], strides = [1, 1, 1]} : vector<28x32x8xf32> to vector<4x32x8xf32>
    %117 = vector.extract_strided_slice %116 {offsets = [0, 0, 0], sizes = [4, 1, 8], strides = [1, 1, 1]} : vector<4x32x8xf32> to vector<4x1x8xf32>
    %118 = vector.extract_strided_slice %109 {offsets = [24, 0, 0], sizes = [4, 32, 8], strides = [1, 1, 1]} : vector<28x32x8xf32> to vector<4x32x8xf32>
    %119 = vector.extract_strided_slice %118 {offsets = [0, 0, 0], sizes = [4, 1, 8], strides = [1, 1, 1]} : vector<4x32x8xf32> to vector<4x1x8xf32>
    %c1_36 = arith.constant 1 : index
    %c0_37 = arith.constant 0 : index
    %c0_38 = arith.constant 0 : index
    %120 = vector.load %arg4[%c1_36, %c0_37, %c0_38] : memref<3x8x128xf32, #tpu.memory_space<vmem>>, vector<1x8x128xf32>
    %121 = vector.shape_cast %120 : vector<1x8x128xf32> to vector<8x128xf32>
    %122 = vector.extract_strided_slice %121 {offsets = [0, 0], sizes = [1, 32], strides = [1, 1]} : vector<8x128xf32> to vector<1x32xf32>
    %123 = vector.extract_strided_slice %121 {offsets = [1, 0], sizes = [1, 64], strides = [1, 1]} : vector<8x128xf32> to vector<1x64xf32>
    %124 = vector.extract_strided_slice %121 {offsets = [2, 0], sizes = [1, 32], strides = [1, 1]} : vector<8x128xf32> to vector<1x32xf32>
    %125 = vector.extract_strided_slice %121 {offsets = [3, 0], sizes = [1, 32], strides = [1, 1]} : vector<8x128xf32> to vector<1x32xf32>
    %126 = vector.extract_strided_slice %121 {offsets = [4, 0], sizes = [1, 32], strides = [1, 1]} : vector<8x128xf32> to vector<1x32xf32>
    %127 = vector.extract_strided_slice %121 {offsets = [5, 0], sizes = [1, 32], strides = [1, 1]} : vector<8x128xf32> to vector<1x32xf32>
    %128 = vector.extract_strided_slice %121 {offsets = [6, 0], sizes = [1, 32], strides = [1, 1]} : vector<8x128xf32> to vector<1x32xf32>
    %c1_39 = arith.constant 1 : index
    %c0_40 = arith.constant 0 : index
    %c0_41 = arith.constant 0 : index
    %129 = vector.load %arg3[%c1_39, %c0_40, %c0_41] : memref<2x96x64xf32, #tpu.memory_space<vmem>>, vector<1x96x64xf32>
    %130 = vector.shape_cast %129 : vector<1x96x64xf32> to vector<96x64xf32>
    %131 = vector.extract_strided_slice %130 {offsets = [0, 0], sizes = [32, 64], strides = [1, 1]} : vector<96x64xf32> to vector<32x64xf32>
    %132 = vector.extract_strided_slice %130 {offsets = [32, 0], sizes = [64, 32], strides = [1, 1]} : vector<96x64xf32> to vector<64x32xf32>
    %133 = vector.shape_cast %107 : vector<8x32xf32> to vector<1x8x32xf32>
    %134 = vector.broadcast %133 : vector<1x8x32xf32> to vector<4x8x32xf32>
    "tpu.trace_start"() <{level = 10 : i32, message = "hld,hdk->hlk"}> : () -> ()
    %cst_42 = arith.constant dense<0.000000e+00> : vector<4x8x8xf32>
    %135 = tpu.matmul %134, %110, %cst_42 {dimension_numbers = #tpu.dot_dimension_numbers<[2], [1], [1], [2], [0, 0, 0, 1, 1, 2], [0], [0]>} : vector<4x8x32xf32>, vector<4x32x8xf32>, vector<4x8x8xf32> -> vector<4x8x8xf32>
    "tpu.trace_stop"() : () -> ()
    %136 = vector.broadcast %115 : vector<4x1x8xf32> to vector<4x8x8xf32>
    %137 = arith.addf %135, %136 : vector<4x8x8xf32>
    "tpu.trace_start"() <{level = 10 : i32, message = "hld,hdk->hlk"}> : () -> ()
    %cst_43 = arith.constant dense<0.000000e+00> : vector<4x8x8xf32>
    %138 = tpu.matmul %134, %111, %cst_43 {dimension_numbers = #tpu.dot_dimension_numbers<[2], [1], [1], [2], [0, 0, 0, 1, 1, 2], [0], [0]>} : vector<4x8x32xf32>, vector<4x32x8xf32>, vector<4x8x8xf32> -> vector<4x8x8xf32>
    "tpu.trace_stop"() : () -> ()
    %139 = vector.broadcast %117 : vector<4x1x8xf32> to vector<4x8x8xf32>
    %140 = arith.addf %138, %139 : vector<4x8x8xf32>
    "tpu.trace_start"() <{level = 10 : i32, message = "hld,hdk->hlk"}> : () -> ()
    %cst_44 = arith.constant dense<0.000000e+00> : vector<4x8x8xf32>
    %141 = tpu.matmul %134, %112, %cst_44 {dimension_numbers = #tpu.dot_dimension_numbers<[2], [1], [1], [2], [0, 0, 0, 1, 1, 2], [0], [0]>} : vector<4x8x32xf32>, vector<4x32x8xf32>, vector<4x8x8xf32> -> vector<4x8x8xf32>
    "tpu.trace_stop"() : () -> ()
    %142 = vector.broadcast %119 : vector<4x1x8xf32> to vector<4x8x8xf32>
    %143 = arith.addf %141, %142 : vector<4x8x8xf32>
    "tpu.trace_start"() <{level = 10 : i32, message = "hlk,hmk->hlm"}> : () -> ()
    %cst_45 = arith.constant dense<0.000000e+00> : vector<4x8x8xf32>
    %144 = tpu.matmul %137, %140, %cst_45 {dimension_numbers = #tpu.dot_dimension_numbers<[2], [2], [1], [1], [0, 0, 0, 1, 1, 1], [0], [0]>} : vector<4x8x8xf32>, vector<4x8x8xf32>, vector<4x8x8xf32> -> vector<4x8x8xf32>
    "tpu.trace_stop"() : () -> ()
    %cst_46 = arith.constant dense<0xFF800000> : vector<4x8xf32>
    %145 = vector.multi_reduction <maximumf>, %144, %cst_46 [2] : vector<4x8x8xf32> to vector<4x8xf32>
    %146 = vector.shape_cast %145 : vector<4x8xf32> to vector<4x8x1xf32>
    %147 = vector.broadcast %146 : vector<4x8x1xf32> to vector<4x8x8xf32>
    %148 = arith.subf %144, %147 : vector<4x8x8xf32>
    %149 = math.exp %148 : vector<4x8x8xf32>
    %cst_47 = arith.constant dense<0.000000e+00> : vector<4x8xf32>
    %150 = vector.multi_reduction <add>, %149, %cst_47 [2] : vector<4x8x8xf32> to vector<4x8xf32>
    %151 = vector.shape_cast %150 : vector<4x8xf32> to vector<4x8x1xf32>
    %152 = tpu.reciprocal %151 {approx = true} : vector<4x8x1xf32> -> vector<4x8x1xf32>
    %153 = vector.broadcast %152 : vector<4x8x1xf32> to vector<4x8x8xf32>
    %154 = arith.mulf %149, %153 : vector<4x8x8xf32>
    "tpu.trace_start"() <{level = 10 : i32, message = "hlm,hmk->hlk"}> : () -> ()
    %cst_48 = arith.constant dense<0.000000e+00> : vector<4x8x8xf32>
    %155 = tpu.matmul %154, %143, %cst_48 {dimension_numbers = #tpu.dot_dimension_numbers<[2], [1], [1], [2], [0, 0, 0, 1, 1, 2], [0], [0]>} : vector<4x8x8xf32>, vector<4x8x8xf32>, vector<4x8x8xf32> -> vector<4x8x8xf32>
    "tpu.trace_stop"() : () -> ()
    "tpu.trace_start"() <{level = 10 : i32, message = "hlk,hdk->hld"}> : () -> ()
    %cst_49 = arith.constant dense<0.000000e+00> : vector<4x8x32xf32>
    %156 = tpu.matmul %155, %113, %cst_49 {dimension_numbers = #tpu.dot_dimension_numbers<[2], [2], [1], [1], [0, 0, 0, 1, 1, 1], [0], [0]>} : vector<4x8x8xf32>, vector<4x32x8xf32>, vector<4x8x32xf32> -> vector<4x8x32xf32>
    "tpu.trace_stop"() : () -> ()
    %cst_50 = arith.constant dense<0.000000e+00> : vector<8x32xf32>
    %157 = vector.multi_reduction <add>, %156, %cst_50 [0] : vector<4x8x32xf32> to vector<8x32xf32>
    %158 = vector.broadcast %122 : vector<1x32xf32> to vector<8x32xf32>
    %159 = arith.addf %157, %158 : vector<8x32xf32>
    %160 = arith.addf %107, %159 : vector<8x32xf32>
    %cst_51 = arith.constant dense<0.000000e+00> : vector<8xf32>
    %161 = vector.multi_reduction <add>, %160, %cst_51 [1] : vector<8x32xf32> to vector<8xf32>
    %162 = vector.shape_cast %161 : vector<8xf32> to vector<8x1xf32>
    %cst_52 = arith.constant 3.200000e+01 : f32
    %163 = vector.broadcast %cst_52 : f32 to vector<8x1xf32>
    %164 = arith.divf %162, %163 : vector<8x1xf32>
    %165 = vector.broadcast %164 : vector<8x1xf32> to vector<8x32xf32>
    %166 = arith.subf %160, %165 : vector<8x32xf32>
    %167 = arith.mulf %166, %166 : vector<8x32xf32>
    %cst_53 = arith.constant dense<0.000000e+00> : vector<8xf32>
    %168 = vector.multi_reduction <add>, %167, %cst_53 [1] : vector<8x32xf32> to vector<8xf32>
    %169 = vector.shape_cast %168 : vector<8xf32> to vector<8x1xf32>
    %cst_54 = arith.constant 3.200000e+01 : f32
    %170 = vector.broadcast %cst_54 : f32 to vector<8x1xf32>
    %171 = arith.divf %169, %170 : vector<8x1xf32>
    %172 = vector.broadcast %164 : vector<8x1xf32> to vector<8x32xf32>
    %173 = arith.subf %160, %172 : vector<8x32xf32>
    %cst_55 = arith.constant 9.99999974E-6 : f32
    %174 = vector.broadcast %cst_55 : f32 to vector<8x1xf32>
    %175 = arith.addf %171, %174 : vector<8x1xf32>
    %176 = math.rsqrt %175 : vector<8x1xf32>
    %177 = vector.broadcast %176 : vector<8x1xf32> to vector<8x32xf32>
    %178 = arith.mulf %173, %177 : vector<8x32xf32>
    %179 = vector.broadcast %125 : vector<1x32xf32> to vector<8x32xf32>
    %180 = arith.mulf %178, %179 : vector<8x32xf32>
    %181 = vector.broadcast %126 : vector<1x32xf32> to vector<8x32xf32>
    %182 = arith.addf %180, %181 : vector<8x32xf32>
    %cst_56 = arith.constant dense<0.000000e+00> : vector<8x64xf32>
    %183 = tpu.matmul %182, %131, %cst_56 {dimension_numbers = #tpu.dot_dimension_numbers<[1], [0], [0], [1], [0, 0, 1, 1], [], []>} : vector<8x32xf32>, vector<32x64xf32>, vector<8x64xf32> -> vector<8x64xf32>
    %184 = vector.broadcast %123 : vector<1x64xf32> to vector<8x64xf32>
    %185 = arith.addf %183, %184 : vector<8x64xf32>
    %cst_57 = arith.constant 0.000000e+00 : f32
    %186 = vector.broadcast %cst_57 : f32 to vector<8x64xf32>
    %187 = arith.maximumf %185, %186 : vector<8x64xf32>
    %cst_58 = arith.constant dense<0.000000e+00> : vector<8x32xf32>
    %188 = tpu.matmul %187, %132, %cst_58 {dimension_numbers = #tpu.dot_dimension_numbers<[1], [0], [0], [1], [0, 0, 1, 1], [], []>} : vector<8x64xf32>, vector<64x32xf32>, vector<8x32xf32> -> vector<8x32xf32>
    %189 = vector.broadcast %124 : vector<1x32xf32> to vector<8x32xf32>
    %190 = arith.addf %188, %189 : vector<8x32xf32>
    %191 = arith.addf %182, %190 : vector<8x32xf32>
    %cst_59 = arith.constant dense<0.000000e+00> : vector<8xf32>
    %192 = vector.multi_reduction <add>, %191, %cst_59 [1] : vector<8x32xf32> to vector<8xf32>
    %193 = vector.shape_cast %192 : vector<8xf32> to vector<8x1xf32>
    %cst_60 = arith.constant 3.200000e+01 : f32
    %194 = vector.broadcast %cst_60 : f32 to vector<8x1xf32>
    %195 = arith.divf %193, %194 : vector<8x1xf32>
    %196 = vector.broadcast %195 : vector<8x1xf32> to vector<8x32xf32>
    %197 = arith.subf %191, %196 : vector<8x32xf32>
    %198 = arith.mulf %197, %197 : vector<8x32xf32>
    %cst_61 = arith.constant dense<0.000000e+00> : vector<8xf32>
    %199 = vector.multi_reduction <add>, %198, %cst_61 [1] : vector<8x32xf32> to vector<8xf32>
    %200 = vector.shape_cast %199 : vector<8xf32> to vector<8x1xf32>
    %cst_62 = arith.constant 3.200000e+01 : f32
    %201 = vector.broadcast %cst_62 : f32 to vector<8x1xf32>
    %202 = arith.divf %200, %201 : vector<8x1xf32>
    %203 = vector.broadcast %195 : vector<8x1xf32> to vector<8x32xf32>
    %204 = arith.subf %191, %203 : vector<8x32xf32>
    %cst_63 = arith.constant 9.99999974E-6 : f32
    %205 = vector.broadcast %cst_63 : f32 to vector<8x1xf32>
    %206 = arith.addf %202, %205 : vector<8x1xf32>
    %207 = math.rsqrt %206 : vector<8x1xf32>
    %208 = vector.broadcast %207 : vector<8x1xf32> to vector<8x32xf32>
    %209 = arith.mulf %204, %208 : vector<8x32xf32>
    %210 = vector.broadcast %127 : vector<1x32xf32> to vector<8x32xf32>
    %211 = arith.mulf %209, %210 : vector<8x32xf32>
    %212 = vector.broadcast %128 : vector<1x32xf32> to vector<8x32xf32>
    %213 = arith.addf %211, %212 : vector<8x32xf32>
    %c2 = arith.constant 2 : index
    %c0_64 = arith.constant 0 : index
    %c0_65 = arith.constant 0 : index
    %214 = vector.load %arg4[%c2, %c0_64, %c0_65] : memref<3x8x128xf32, #tpu.memory_space<vmem>>, vector<1x8x128xf32>
    %215 = vector.shape_cast %214 : vector<1x8x128xf32> to vector<8x128xf32>
    %216 = vector.extract_strided_slice %215 {offsets = [0, 0], sizes = [1, 32], strides = [1, 1]} : vector<8x128xf32> to vector<1x32xf32>
    %217 = vector.extract_strided_slice %215 {offsets = [1, 0], sizes = [1, 32], strides = [1, 1]} : vector<8x128xf32> to vector<1x32xf32>
    %cst_66 = arith.constant dense<0.000000e+00> : vector<8xf32>
    %218 = vector.multi_reduction <add>, %213, %cst_66 [1] : vector<8x32xf32> to vector<8xf32>
    %219 = vector.shape_cast %218 : vector<8xf32> to vector<8x1xf32>
    %cst_67 = arith.constant 3.200000e+01 : f32
    %220 = vector.broadcast %cst_67 : f32 to vector<8x1xf32>
    %221 = arith.divf %219, %220 : vector<8x1xf32>
    %222 = vector.broadcast %221 : vector<8x1xf32> to vector<8x32xf32>
    %223 = arith.subf %213, %222 : vector<8x32xf32>
    %224 = arith.mulf %223, %223 : vector<8x32xf32>
    %cst_68 = arith.constant dense<0.000000e+00> : vector<8xf32>
    %225 = vector.multi_reduction <add>, %224, %cst_68 [1] : vector<8x32xf32> to vector<8xf32>
    %226 = vector.shape_cast %225 : vector<8xf32> to vector<8x1xf32>
    %cst_69 = arith.constant 3.200000e+01 : f32
    %227 = vector.broadcast %cst_69 : f32 to vector<8x1xf32>
    %228 = arith.divf %226, %227 : vector<8x1xf32>
    %229 = vector.broadcast %221 : vector<8x1xf32> to vector<8x32xf32>
    %230 = arith.subf %213, %229 : vector<8x32xf32>
    %cst_70 = arith.constant 9.99999997E-7 : f32
    %231 = vector.broadcast %cst_70 : f32 to vector<8x1xf32>
    %232 = arith.addf %228, %231 : vector<8x1xf32>
    %233 = math.rsqrt %232 : vector<8x1xf32>
    %234 = vector.broadcast %233 : vector<8x1xf32> to vector<8x32xf32>
    %235 = arith.mulf %230, %234 : vector<8x32xf32>
    %236 = vector.broadcast %216 : vector<1x32xf32> to vector<8x32xf32>
    %237 = arith.mulf %235, %236 : vector<8x32xf32>
    %238 = vector.broadcast %217 : vector<1x32xf32> to vector<8x32xf32>
    %239 = arith.addf %237, %238 : vector<8x32xf32>
    %c0_71 = arith.constant 0 : index
    %c0_72 = arith.constant 0 : index
    %c0_73 = arith.constant 0 : index
    %240 = vector.load %arg5[%c0_71, %c0_72, %c0_73] : memref<1x8x32xf32, #tpu.memory_space<vmem>>, vector<1x8x32xf32>
    %241 = vector.shape_cast %240 : vector<1x8x32xf32> to vector<8x32xf32>
    %242 = vector.shape_cast %239 : vector<8x32xf32> to vector<1x8x32xf32>
    tpu.vector_store %arg5[%c0_71, %c0_72, %c0_73], %242 {strides = array<i32>} : memref<1x8x32xf32, #tpu.memory_space<vmem>>, vector<1x8x32xf32>,
    return
  }
  func.func @transform_0(%arg0: i32) -> (i32, i32, i32) {
    %c0_i32 = arith.constant 0 : i32
    %c0_i32_0 = arith.constant 0 : i32
    %c0_i32_1 = arith.constant 0 : i32
    return %arg0, %c0_i32, %c0_i32_0 : i32, i32, i32
  }
  func.func @transform_1(%arg0: i32) -> (i32, i32, i32, i32) {
    %c0_i32 = arith.constant 0 : i32
    %c0_i32_0 = arith.constant 0 : i32
    %c0_i32_1 = arith.constant 0 : i32
    %c0_i32_2 = arith.constant 0 : i32
    %c0_i32_3 = arith.constant 0 : i32
    return %c0_i32, %c0_i32_0, %c0_i32_1, %c0_i32_2 : i32, i32, i32, i32
  }
  func.func @transform_2(%arg0: i32) -> (i32, i32, i32) {
    %c0_i32 = arith.constant 0 : i32
    %c0_i32_0 = arith.constant 0 : i32
    %c0_i32_1 = arith.constant 0 : i32
    %c0_i32_2 = arith.constant 0 : i32
    return %c0_i32, %c0_i32_0, %c0_i32_1 : i32, i32, i32
  }
  func.func @transform_3(%arg0: i32) -> (i32, i32, i32) {
    %c0_i32 = arith.constant 0 : i32
    %c0_i32_0 = arith.constant 0 : i32
    %c0_i32_1 = arith.constant 0 : i32
    %c0_i32_2 = arith.constant 0 : i32
    return %c0_i32, %c0_i32_0, %c0_i32_1 : i32, i32, i32
  }
  func.func @transform_4(%arg0: i32) -> (i32, i32, i32) {
    %c0_i32 = arith.constant 0 : i32
    %c0_i32_0 = arith.constant 0 : i32
    %c0_i32_1 = arith.constant 0 : i32
    return %arg0, %c0_i32, %c0_i32_0 : i32, i32, i32
  }
}

</mosaic_0001>

<bundles_post_ra>
// kernel: tpu_custom_call.1
= control target key start
LH: loop header
LB: loop body
LE: loop exit
PB: predicated region body
PF: predicated region fallthrough
CT: control target
= control target key end

     0   :  { %9 = vsyncpa [#allocation3], 0  ;;  %s3163_s0 = inlined_call_operand.vmem [shape: f32[2,8,32], index: 0, kind: input, shape index: {}]   ;;  %s3164_s1 = inlined_call_operand.vmem [shape: f32[2,28,32,8], index: 1, kind: input, shape index: {}]   ;;  %s3165_s2 = inlined_call_operand.vmem [shape: f32[2,96,64], index: 2, kind: input, shape index: {}]   ;;  %s3166_s3 = inlined_call_operand.vmem [shape: f32[3,8,128], index: 3, kind: input, shape index: {}]   ;;  %s3167_s4 = inlined_call_operand.hbm [shape: f32[2,8,32], index: 4, kind: output, shape index: {}]  }
   0x1   :  { %11 = vsyncpa [#allocation3 + $0x1], 0  ;;  %s2349_s15 = smov 0   ;;  %s2351_s16 = smov 0  }
   0x2   :  { %s2353_s17 = smov 0   ;;  %s2355_s18 = smov 0  }
   0x3 LB: > { %s2370_s19 = sadd.s32 4294967295, %s2321_s18   ;;  %s1983_s20 = sadd.s32 4294967294, %s2321_s18   ;;  %s2321_s18 = sphi %s2355_s18, %s3173_s18   ;;  %s2317_s17 = sphi %s2353_s17, %s3172_s17   ;;  %s2313_s16 = sphi %s2351_s16, %s3171_s16   ;;  %s2309_s15 = sphi %s2349_s15, %s3170_s15  }
   0x4   : > { %s2374_s21 = sadd.s32 1, %s2321_s18   ;;  %s113_s22 = sadd.s32 1, %s2317_s17 }
   0x5   : > { %s110_s23 = ssub.s32 %s2321_s18, %s2374_s21  ;;  %p123_p0 = scmp.ne.s32.totalorder %s2317_s17, %s2313_s16 }
   0x6   : > { %p111_p1 = scmp.eq.s32.totalorder %s110_s23, 0  ;;  %p124_p2 = scmp.eq.s32.totalorder %s2370_s19, 1 }
   0x7   : > { %p129_p3 = scmp.ne.s32.totalorder %s2313_s16, %s2309_s15  ;;  %p130_p4 = scmp.eq.s32.totalorder %s1983_s20, 1 }
   0x8   : > { %s2385_s24 = scalar_select %p111_p1, %s2317_s17, %s113_s22  }
   0x9   : > { %p2387_p5 = por %p124_p2, %p123_p0  ;;  %p2391_p6 = por %p130_p4, %p129_p3 }
   0xa   : > { %p1986_p7 = scmp.ge.s32.totalorder %s2321_s18, 1  ;;  %p164_p8 = scmp.lt.s32.totalorder %s2321_s18, 3 }
   0xc   : > { %p165_p9 = pnand %p1986_p7, %p164_p8 }
   0xd   : > { %p189_p10 = scmp.lt.s32.totalorder (!%p165_p9), %s2370_s19, 1  ;;  %s186_s5 = sand.u32 (!%p165_p9), 1, %s2313_s16  }
   0xe   : > { %168 = sbr.rel (%p165_p9) target bundleno = 3521 (0xdc1), region = 36  ;;  %s1987_s6 = sshll.u32 (!%p165_p9), %s186_s5, 3 }
   0xf   : > { %s2172_s9 = sshll.u32 (!%p165_p9), %s2370_s19, 3 }
  0x10   : > { %s1919_s12 = scalar_lea.hbm (!%p165_p9), %s3167_s4, %s2172_s9 }
  0x11   : > { %s1923_s20 = sshll.u32 (!%p165_p9), %s1919_s12, 4  ;;  %s1924_s20 = int_to_ptr.hbm [resolvable:$true] %s1923_s20 }
  0x12   : > { %s2273_s22 = sshra.s32 (!%p165_p9), %s1924_s20, 4  ;;  %s2274_s22 = int_to_ptr.hbm [resolvable:$true] %s2273_s22 }
  0x13   : > { %v197_v0 = vld [vmem:[%s3164_s1 + $0x18] sm:$0xff]  ;;  %v196_v4 = vld [vmem:[%s3164_s1 + $0x10] sm:$0xff]  ;;  %v195_v8 = vld [vmem:[%s3164_s1 + $0x8] sm:$0xff]  ;;  %s190_s28 = scalar_select %p189_p10, %s2370_s19, 1  ;;  %vm287_vm0 = vcmask 261120   ;;  %vm539_vm1 = vcmask 64512  }
  0x14   : > { %v205_v1 = vld [vmem:[%s3164_s1 + $0x58] sm:$0xff]  ;;  %303 = vmatpush.msra.mxu1 %v197_v0  ;;  %v204_v5 = vld [vmem:[%s3164_s1 + $0x50] sm:$0xff]  ;;  %v203_v9 = vld [vmem:[%s3164_s1 + $0x48] sm:$0xff]  ;;  %vm989_vm6 = vcmask 523264   ;;  %s1909_s19 = scalar_lea.sflag [#allocation3], %s186_s5  ;;  %s2275_s23 = scalar_lea.hbm %s2274_s22, 8 }
  0x15   : > { %v209_v2 = vld [vmem:[%s3164_s1 + $0x78] sm:$0xff]  ;;  %343 = vmatpush.msra.mxu2 %v205_v1  ;;  %v208_v6 = vld [vmem:[%s3164_s1 + $0x70] sm:$0xff]  ;;  %v207_v10 = vld [vmem:[%s3164_s1 + $0x68] sm:$0xff]  ;;  %s1988_s13 = sshll.u32 %s190_s28, 3  ;;  %p2276_p11 = scmp.ne.s32.totalorder %s2274_s22, %s2275_s23 }
  0x16   : > { %v213_v3 = vld [vmem:[%s3164_s1 + $0x98] sm:$0xff]  ;;  %363 = vmatpush.msra.mxu3 %v209_v2  ;;  %v212_v7 = vld [vmem:[%s3164_s1 + $0x90] sm:$0xff]  ;;  %304 = vmatpush.msra.mxu1 %v196_v4  ;;  %v211_v11 = vld [vmem:[%s3164_s1 + $0x88] sm:$0xff]  ;;  %s192_s30 = scalar_lea.vmem %s3163_s0, %s1988_s13  ;;  %s188_s13 = scalar_lea.vmem [#allocation2], %s1987_s6 }
  0x17   : > { %387 = vmatpush.msra.mxu0 %v213_v3  ;;  %344 = vmatpush.msra.mxu2 %v204_v5  ;;  %v194_v12 = vld [vmem:[%s3164_s1] sm:$0xff]  ;;  %v201_v17 = vld [vmem:[%s3164_s1 + $0x38] sm:$0xff]  ;;  %v200_v20 = vld [vmem:[%s3164_s1 + $0x30] sm:$0xff]  ;;  %s1921_s14 = sshll.u32 %s188_s13, 4  ;;  %p2277_p12 = pnand %p2276_p11, %p2387_p5  ;;  %s1922_s14 = int_to_ptr.vmem [resolvable:$true] %s1921_s14 }
  0x18   : > { %364 = vmatpush.msra.mxu3 %v208_v6  ;;  %v202_v13 = vld [vmem:[%s3164_s1 + $0x40] sm:$0xff]  ;;  %305 = vmatpush.msra.mxu1 %v195_v8  ;;  %v221_v18 = vld [vmem:[%s3164_s1 + $0xd8] sm:$0xff]  ;;  %v220_v21 = vld [vmem:[%s3164_s1 + $0xd0] sm:$0xff]  ;;  %p2280_p0 = scmp.lt.s32.totalorder %s2274_s22, %s3167_s4 }
  0x19   : > { %388 = vmatpush.msra.mxu0 %v212_v7  ;;  %345 = vmatpush.msra.mxu2 %v203_v9  ;;  %v206_v14 = vld [vmem:[%s3164_s1 + $0x60] sm:$0xff]  ;;  %v225_v19 = vld [vmem:[%s3164_s1 + $0xf8] sm:$0xff]  ;;  %v224_v22 = vld [vmem:[%s3164_s1 + $0xf0] sm:$0xff]  ;;  %p2278_p13 = pneg %p2277_p12 }
  0x1a   : > { %v210_v15 = vld [vmem:[%s3164_s1 + $0x80] sm:$0xff]  ;;  %365 = vmatpush.msra.mxu3 %v207_v10  ;;  %306 = vmatpush.msra.mxu1 %v194_v12  ;;  %v229_v23 = vld [vmem:[%s3164_s1 + $0x118] sm:$0xff]  ;;  %v228_v24 = vld [vmem:[%s3164_s1 + $0x110] sm:$0xff] }
  0x1b   : > { %389 = vmatpush.msra.mxu0 %v211_v11  ;;  %v2450_v16 = vld [vmem:[%s192_s30] sm:$0xff]  ;;  %346 = vmatpush.msra.mxu2 %v202_v13  ;;  %v199_v25 = vld [vmem:[%s3164_s1 + $0x28] sm:$0xff]  ;;  %v217_v32 = vld [vmem:[%s3164_s1 + $0xb8] sm:$0xff]  ;;  %s2279_s30 = scalar_lea.hbm %s3167_s4, 16 }
  0x1c   : > { %366 = vmatpush.msra.mxu3 %v206_v14  ;;  %1989 = vmatmul.msk.f32.vlgmr.msra.gmra.mxu1 %vm287_vm0, %v2450_v16  ;;  %v219_v26 = vld [vmem:[%s3164_s1 + $0xc8] sm:$0xff]  ;;  %v198_v29 = vld [vmem:[%s3164_s1 + $0x20] sm:$0xff]  ;;  %v216_v34 = vld [vmem:[%s3164_s1 + $0xb0] sm:$0xff]  ;;  %p2281_p1 = scmp.lt.s32.totalorder %s2279_s30, %s2275_s23 }
  0x1d   : > { %390 = vmatpush.msra.mxu0 %v210_v15  ;;  %1991 = vmatmul.msk.f32.vlgmr.msra.gmra.mxu2 %vm287_vm0, %v2450_v16  ;;  %v223_v27 = vld [vmem:[%s3164_s1 + $0xe8] sm:$0xff]  ;;  %v218_v30 = vld [vmem:[%s3164_s1 + $0xc0] sm:$0xff]  ;;  %v237_v37 = vld [vmem:[%s3164_s1 + $0x158] sm:$0xff] }
  0x1e   : > { %1992 = vmatmul.msk.f32.vlgmr.msra.gmra.mxu3 %vm287_vm0, %v2450_v16  ;;  %1993 = vmatmul.msk.f32.vlgmr.msra.gmra.mxu0 %vm287_vm0, %v2450_v16  ;;  %v227_v28 = vld [vmem:[%s3164_s1 + $0x108] sm:$0xff]  ;;  %v222_v31 = vld [vmem:[%s3164_s1 + $0xe0] sm:$0xff]  ;;  %v241_v38 = vld [vmem:[%s3164_s1 + $0x178] sm:$0xff]  ;;  %p2282_p2 = por %p2281_p1, %p2280_p0 }
  0x1f   : > { %323 = vmatpush.msrb.mxu1 %v201_v17  ;;  %427 = vmatpush.msrb.mxu2 %v221_v18  ;;  %v226_v33 = vld [vmem:[%s3164_s1 + $0x100] sm:$0xff]  ;;  %v215_v35 = vld [vmem:[%s3164_s1 + $0xa8] sm:$0xff]  ;;  %v233_v39 = vld [vmem:[%s3164_s1 + $0x138] sm:$0xff] }
  0x20   : > { %447 = vmatpush.msrb.mxu3 %v225_v19  ;;  %471 = vmatpush.msrb.mxu0 %v229_v23  ;;  %v214_v36 = vld [vmem:[%s3164_s1 + $0xa0] sm:$0xff]  ;;  %v236_v40 = vld [vmem:[%s3164_s1 + $0x150] sm:$0xff]  ;;  %v235_v43 = vld [vmem:[%s3164_s1 + $0x148] sm:$0xff]  ;;  %p2283_p3 = pnand %p2282_p2, %p2278_p13 }
  0x21   : > { %324 = vmatpush.msrb.mxu1 %v200_v20  ;;  %428 = vmatpush.msrb.mxu2 %v220_v21  ;;  %v240_v41 = vld [vmem:[%s3164_s1 + $0x170] sm:$0xff]  ;;  %v239_v44 = vld [vmem:[%s3164_s1 + $0x168] sm:$0xff]  ;;  %v234_v46 = vld [vmem:[%s3164_s1 + $0x140] sm:$0xff] }
  0x22   : > { %448 = vmatpush.msrb.mxu3 %v224_v22  ;;  %472 = vmatpush.msrb.mxu0 %v228_v24  ;;  %v232_v42 = vld [vmem:[%s3164_s1 + $0x130] sm:$0xff]  ;;  %v231_v45 = vld [vmem:[%s3164_s1 + $0x128] sm:$0xff]  ;;  %v238_v47 = vld [vmem:[%s3164_s1 + $0x160] sm:$0xff] }
  0x23   : > { %325 = vmatpush.msrb.mxu1 %v199_v25  ;;  %429 = vmatpush.msrb.mxu2 %v219_v26  ;;  %v230_v48 = vld [vmem:[%s3164_s1 + $0x120] sm:$0xff] }
  0x24   : > { %449 = vmatpush.msrb.mxu3 %v223_v27  ;;  %473 = vmatpush.msrb.mxu0 %v227_v28  ;;  %v262_v49 = vld [vmem:[%s3164_s1 + $0x280] sm:$0xff] }
  0x25   : > { %326 = vmatpush.msrb.mxu1 %v198_v29  ;;  %430 = vmatpush.msrb.mxu2 %v218_v30  ;;  %v258_v50 = vld [vmem:[%s3164_s1 + $0x200] sm:$0xff]  ;;  %v371_v51 = vperm.slane %v262_v49, 0 }
  0x26   : > { %450 = vmatpush.msrb.mxu3 %v222_v31  ;;  %1990 = vmatmul.msk.f32.vlgmr.msrb.gmra.mxu1 %vm287_vm0, %v2450_v16  ;;  %v283_v52 = vperm.slane %v258_v50, 0  ;;  %v266_v58 = vld [vmem:[%s3164_s1 + $0x300] sm:$0xff] }
  0x27   : > { %1995 = vmatmul.msk.f32.vlgmr.msrb.gmra.mxu2 %vm287_vm0, %v2450_v16  ;;  %1996 = vmatmul.msk.f32.vlgmr.msrb.gmra.mxu3 %vm287_vm0, %v2450_v16  ;;  %v455_v61 = vperm.slane %v266_v58, 0  ;;  %v264_v62 = vld [vmem:[%s3164_s1 + $0x2c0] sm:$0xff] }
  0x28   : > { %407 = vmatpush.msra.mxu1 %v217_v32  ;;  %474 = vmatpush.msrb.mxu0 %v226_v33  ;;  %v265_v63 = vld [vmem:[%s3164_s1 + $0x2e0] sm:$0xff]  ;;  %v373_v5 = vperm.slane %v264_v62, 0 }
  0x29   : > { %1997 = vmatmul.msk.f32.vlgmr.msrb.gmra.mxu0 %vm287_vm0, %v2450_v16  ;;  %511 = vmatpush.msra.mxu2 %v237_v37  ;;  %v263_v0 = vld [vmem:[%s3164_s1 + $0x2a0] sm:$0xff]  ;;  %v374_v6 = vperm.slane %v265_v63, 0 }
  0x2a   : > { %408 = vmatpush.msra.mxu1 %v216_v34  ;;  %531 = vmatpush.msra.mxu3 %v241_v38  ;;  %v260_v2 = vld [vmem:[%s3164_s1 + $0x240] sm:$0xff]  ;;  %v372_v8 = vperm.slane %v263_v0, 0  ;;  %v245_v0 = vld [vmem:[%s3164_s1 + $0x198] sm:$0xff] }
  0x2b   : > { %512 = vmatpush.msra.mxu2 %v236_v40  ;;  %v261_v3 = vld [vmem:[%s3164_s1 + $0x260] sm:$0xff]  ;;  %v285_v9 = vperm.slane %v260_v2, 0  ;;  %v244_v2 = vld [vmem:[%s3164_s1 + $0x190] sm:$0xff] }
  0x2c   : > { %409 = vmatpush.msra.mxu1 %v215_v35  ;;  %532 = vmatpush.msra.mxu3 %v240_v41  ;;  %v259_v4 = vld [vmem:[%s3164_s1 + $0x220] sm:$0xff]  ;;  %v286_v10 = vperm.slane %v261_v3, 0  ;;  %v243_v3 = vld [vmem:[%s3164_s1 + $0x188] sm:$0xff] }
  0x2d   : > { %513 = vmatpush.msra.mxu2 %v235_v43  ;;  %v284_v11 = vperm.slane %v259_v4, 0  ;;  %v267_v22 = vld [vmem:[%s3164_s1 + $0x320] sm:$0xff] }
  0x2e   : > { %410 = vmatpush.msra.mxu1 %v214_v36  ;;  %533 = vmatpush.msra.mxu3 %v239_v44  ;;  %v456_v23 = vperm.slane %v267_v22, 0  ;;  %v268_v24 = vld [vmem:[%s3164_s1 + $0x340] sm:$0xff]  ;;  %v257_v22 = vld [vmem:[%s3164_s1 + $0x1f8] sm:$0xff] }
  0x2f   : > { %1994 = vmatmul.msk.f32.vlgmr.msra.gmra.mxu1 %vm287_vm0, %v2450_v16  ;;  %514 = vmatpush.msra.mxu2 %v234_v46  ;;  %v269_v25 = vld [vmem:[%s3164_s1 + $0x360] sm:$0xff]  ;;  %v457_v28 = vperm.slane %v268_v24, 0 }
  0x30   : > { %491 = vmatpush.msrb.mxu1 %v233_v39  ;;  %534 = vmatpush.msra.mxu3 %v238_v47  ;;  %v458_v29 = vperm.slane %v269_v25, 0  ;;  %v250_v24 = vld [vmem:[%s3164_s1 + $0x1c0] sm:$0xff]  ;;  %v255_v25 = vld [vmem:[%s3164_s1 + $0x1e8] sm:$0xff] }
  0x31   : > { %1999 = vmatmul.msk.f32.vlgmr.msra.gmra.mxu2 %vm287_vm0, %v2450_v16  ;;  %2000 = vmatmul.msk.f32.vlgmr.msra.gmra.mxu3 %vm287_vm0, %v2450_v16 }
  0x32   : > { %492 = vmatpush.msrb.mxu1 %v232_v42 }
  0x34   : > { %493 = vmatpush.msrb.mxu1 %v231_v45 }
  0x36   : > { %494 = vmatpush.msrb.mxu1 %v230_v48 }
  0x37   : > { %1998 = vmatmul.msk.f32.vlgmr.msrb.gmra.mxu1 %vm287_vm0, %v2450_v16 }
  0x99   : > { %v308_v53 = vpop.f32.mrf.mxu1 }
  0x9a   : > { %v309_v56 = vadd.f32 %v308_v53, %v283_v52 }
  0x9b   : > { %v392_v54 = vpop.f32.mrf.mxu0 }
  0x9c   : > { %v393_v55 = vadd.f32 %v392_v54, %v371_v51 }
  0x9e   : > { %2001 = vmatpush.xpose.msk.msra.mxu0 %vm539_vm1, %v393_v55 }
  0xa0   : > { %v348_v57 = vpop.f32.mrf.mxu2 }
  0xa1   : > { %v368_v59 = vpop.f32.mrf.mxu3  ;;  %2002 = vmatmul.msk.f32.vlgmr.msra.gmra.mxu0 %vm539_vm1, %v309_v56  ;;  %v349_v19 = vadd.f32 %v348_v57, %v285_v9 }
  0xa2   : > { %v369_v20 = vadd.f32 %v368_v59, %v286_v10 }
  0xa3   : > { %v328_v60 = vpop.f32.mrf.mxu1 }
  0xa4   : > { %v329_v21 = vadd.f32 %v328_v60, %v284_v11 }
  0xa6   : > { %v476_v1 = vpop.f32.mrf.mxu0 }
  0xa7   : > { %v477_v7 = vadd.f32 %v476_v1, %v455_v61 }
  0xa9   : > { %706 = vmatpush.msrb.mxu0 %v477_v7 }
  0xaa   : > { %v432_v12 = vpop.f32.mrf.mxu2  ;;  %v452_v13 = vpop.f32.mrf.mxu3 }
  0xab   : > { %v433_v14 = vadd.f32 %v432_v12, %v373_v5  ;;  %v453_v15 = vadd.f32 %v452_v13, %v374_v6  ;;  %2013 = vmatpush.xpose.msk.msra.mxu0 %vm539_vm1, %v245_v0  ;;  %v242_v5 = vld [vmem:[%s3164_s1 + $0x180] sm:$0xff]  ;;  %v280_v0 = vld [vmem:[%s3165_s2 + $0x48] sm:$0xff] }
  0xac   : > { %v412_v17 = vpop.f32.mrf.mxu1 }
  0xad   : > { %v413_v18 = vadd.f32 %v412_v17, %v372_v8  ;;  %2005 = vmatpush.xpose.msk.msrb.mxu2 %vm539_vm1, %v433_v14  ;;  %2007 = vmatpush.xpose.msk.msrb.mxu3 %vm539_vm1, %v453_v15  ;;  %v249_v14 = vld [vmem:[%s3164_s1 + $0x1b8] sm:$0xff]  ;;  %v248_v17 = vld [vmem:[%s3164_s1 + $0x1b0] sm:$0xff] }
  0xae   : > { %v253_v15 = vld [vmem:[%s3164_s1 + $0x1d8] sm:$0xff] }
  0xaf   : > { %2003 = vmatpush.xpose.msk.msra.mxu1 %vm539_vm1, %v413_v18  ;;  %2014 = vmatpush.xpose.msk.msra.mxu0 %vm539_vm1, %v244_v2  ;;  %v247_v18 = vld [vmem:[%s3164_s1 + $0x1a8] sm:$0xff] }
  0xb0   : > { %2006 = vmatmul.msk.f32.vlgmr.msrb.gmra.mxu2 %vm539_vm1, %v349_v19  ;;  %2008 = vmatmul.msk.f32.vlgmr.msrb.gmra.mxu3 %vm539_vm1, %v369_v20  ;;  %v246_v19 = vld [vmem:[%s3164_s1 + $0x1a0] sm:$0xff]  ;;  %v252_v20 = vld [vmem:[%s3164_s1 + $0x1d0] sm:$0xff] }
  0xb2   : > { %2004 = vmatmul.msk.f32.vlgmr.msra.gmra.mxu1 %vm539_vm1, %v329_v21  ;;  %v251_v21 = vld [vmem:[%s3164_s1 + $0x1c8] sm:$0xff] }
  0xb3   : > { %2015 = vmatpush.xpose.msk.msra.mxu0 %vm539_vm1, %v243_v3  ;;  %v279_v3 = vld [vmem:[%s3165_s2 + $0x40] sm:$0xff] }
  0xb4   : > { %v496_v26 = vpop.f32.mrf.mxu1  ;;  %v516_v30 = vpop.f32.mrf.mxu2 }
  0xb5   : > { %v497_v27 = vadd.f32 %v496_v26, %v456_v23  ;;  %v517_v31 = vadd.f32 %v516_v30, %v457_v28  ;;  %v536_v32 = vpop.f32.mrf.mxu3  ;;  %v256_v23 = vld [vmem:[%s3164_s1 + $0x1f0] sm:$0xff]  ;;  %v254_v26 = vld [vmem:[%s3164_s1 + $0x1e0] sm:$0xff] }
  0xb6   : > { %v537_v33 = vadd.f32 %v536_v32, %v458_v29 }
  0xb7   : > { %729 = vmatpush.msrb.mxu1 %v497_v27  ;;  %752 = vmatpush.msra.mxu2 %v517_v31 }
  0xb8   : > { %775 = vmatpush.msra.mxu3 %v537_v33  ;;  %2016 = vmatpush.xpose.msk.msra.mxu0 %vm539_vm1, %v242_v5  ;;  %v278_v5 = vld [vmem:[%s3165_s2 + $0x38] sm:$0xff] }
  0xb9   : > { %2018 = vmatpush.xpose.msk.msra.mxu1 %vm539_vm1, %v249_v14  ;;  %2023 = vmatpush.xpose.msk.msrb.mxu2 %vm539_vm1, %v253_v15 }
  0xba   : > { %2028 = vmatpush.xpose.msk.msrb.mxu3 %vm539_vm1, %v257_v22 }
  0xbd   : > { %2019 = vmatpush.xpose.msk.msra.mxu1 %vm539_vm1, %v248_v17  ;;  %2024 = vmatpush.xpose.msk.msrb.mxu2 %vm539_vm1, %v252_v20  ;;  %v276_v20 = vld [vmem:[%s3165_s2 + $0x28] sm:$0xff] }
  0xbe   : > { %2029 = vmatpush.xpose.msk.msrb.mxu3 %vm539_vm1, %v256_v23 }
  0xc1   : > { %2020 = vmatpush.xpose.msk.msra.mxu1 %vm539_vm1, %v247_v18  ;;  %2025 = vmatpush.xpose.msk.msrb.mxu2 %vm539_vm1, %v251_v21  ;;  %v275_v21 = vld [vmem:[%s3165_s2 + $0x20] sm:$0xff] }
  0xc2   : > { %2030 = vmatpush.xpose.msk.msrb.mxu3 %vm539_vm1, %v255_v25 }
  0xc5   : > { %2021 = vmatpush.xpose.msk.msra.mxu1 %vm539_vm1, %v246_v19  ;;  %2026 = vmatpush.xpose.msk.msrb.mxu2 %vm539_vm1, %v250_v24  ;;  %v277_v19 = vld [vmem:[%s3165_s2 + $0x30] sm:$0xff] }
  0xc6   : > { %2031 = vmatpush.xpose.msk.msrb.mxu3 %vm539_vm1, %v254_v26 }
 0x11e   : > { %v563_v34 = vpop.f32.mrf.mxu0 }
 0x11f   : > { %v644_v35 = vsel %vm539_vm1, %v563_v34, -inf }
 0x120   : > { %645 = vmax.xlane.f32.xlu1 %v644_v35 }
 0x12f   : > { %v589_v36 = vpop.f32.mrf.mxu1 }
 0x130   : > { %v647_v37 = vsel %vm539_vm1, %v589_v36, -inf }
 0x131   : > { %648 = vmax.xlane.f32.xlu1 %v647_v37  ;;  %v2702_v37 = vld [vmem:[%s3166_s3] sm:$0xff] }
 0x132   : > { %v961_v15 = vperm.slane %v2702_v37, 4  ;;  %v963_v22 = vperm.slane %v2702_v37, 1  ;;  %v988_v26 = vperm.slane %v2702_v37, 2 }
 0x133   : > { %v615_v38 = vpop.f32.mrf.mxu2  ;;  %v641_v40 = vpop.f32.mrf.mxu3 }
 0x134   : > { %v650_v39 = vsel %vm539_vm1, %v615_v38, -inf  ;;  %v653_v41 = vsel %vm539_vm1, %v641_v40, -inf }
 0x135   : > { %651 = vmax.xlane.f32.xlu0 %v650_v39 }
 0x13d   : > { %654 = vmax.xlane.f32.xlu0 %v653_v41  ;;  %v927_v41 = vperm.slane %v2702_v37, 0 }
 0x193   : > { %v646_v42 = vpop.xlane.xlu1 %645 }
 0x194   : > { %v656_v43 = vsub.f32 %v563_v34, %v646_v42 }
 0x196   : > { %v660_v44 = vmul.f32 1.442695, %v656_v43 }
 0x198   : > { %2215 = vpow2.f32 %v660_v44 }
 0x19e   : > { %v2216_v45 = vpop.eup %2215 }
 0x19f   : > { %v668_v46 = vsel %vm539_vm1, %v2216_v45, 0.0 }
 0x1a0   : > { %669 = vadd.xlane.f32.xlu0 %v668_v46 }
 0x1a4   : > { %v649_v47 = vpop.xlane.xlu1 %648 }
 0x1a5   : > { %v657_v48 = vsub.f32 %v589_v36, %v649_v47  ;;  %v2323_v47 = vmov 32.0  }
 0x1a7   : > { %v662_v49 = vmul.f32 1.442695, %v657_v48 }
 0x1a8   : > { %v652_v50 = vpop.xlane.xlu0 %651 }
 0x1a9   : > { %2217 = vpow2.f32 %v662_v49  ;;  %v658_v51 = vsub.f32 %v615_v38, %v652_v50 }
 0x1ab   : > { %v664_v52 = vmul.f32 1.442695, %v658_v51 }
 0x1ad   : > { %2219 = vpow2.f32 %v664_v52 }
 0x1af   : > { %v2218_v53 = vpop.eup %2217 }
 0x1b0   : > { %v655_v54 = vpop.xlane.xlu0 %654  ;;  %v671_v55 = vsel %vm539_vm1, %v2218_v53, 0.0 }
 0x1b1   : > { %v659_v56 = vsub.f32 %v641_v40, %v655_v54  ;;  %672 = vadd.xlane.f32.xlu1 %v671_v55 }
 0x1b3   : > { %v2220_v57 = vpop.eup %2219  ;;  %v666_v58 = vmul.f32 1.442695, %v659_v56 }
 0x1b4   : > { %v674_v59 = vsel %vm539_vm1, %v2220_v57, 0.0 }
 0x1b5   : > { %2221 = vpow2.f32 %v666_v58  ;;  %675 = vadd.xlane.f32.xlu2 %v674_v59  ;;  %v274_v58 = vld [vmem:[%s3165_s2 + $0x18] sm:$0xff]  ;;  %v273_v59 = vld [vmem:[%s3165_s2 + $0x10] sm:$0xff] }
 0x1bb   : > { %v2222_v60 = vpop.eup %2221 }
 0x1bc   : > { %v677_v61 = vsel %vm539_vm1, %v2222_v60, 0.0 }
 0x1bd   : > { %678 = vadd.xlane.f32.xlu2 %v677_v61  ;;  %v271_v61 = vld [vmem:[%s3165_s2] sm:$0xff] }
 0x213   : > { %v670_v62 = vpop.xlane.xlu0 %669 }
 0x214   : > { %2223 = vrcp.f32 %v670_v62  ;;  %v282_v62 = vld [vmem:[%s3165_s2 + $0x58] sm:$0xff] }
 0x21a   : > { %v2224_v63 = vpop.eup %2223 }
 0x21b   : > { %v684_v1 = vmul.f32 %v2224_v63, %v2216_v45  ;;  %v281_v63 = vld [vmem:[%s3165_s2 + $0x50] sm:$0xff] }
 0x21d   : > { %2009 = vmatmul.msk.f32.vlgmr.msrb.gmra.mxu0 %vm539_vm1, %v684_v1 }
 0x21e   : > { %979 = vmatpush.msrb.mxu0 %v274_v58  ;;  %v2053_v58 = vld [vmem:[%s3164_s1 + $0x410] sm:$0xff] }
 0x220   : > { %980 = vmatpush.msrb.mxu0 %v273_v59 }
 0x224   : > { %v673_v4 = vpop.xlane.xlu1 %672 }
 0x225   : > { %2225 = vrcp.f32 %v673_v4 }
 0x228   : > { %v676_v6 = vpop.xlane.xlu2 %675 }
 0x229   : > { %2227 = vrcp.f32 %v676_v6 }
 0x22b   : > { %v2226_v7 = vpop.eup %2225 }
 0x22c   : > { %v685_v8 = vmul.f32 %v2226_v7, %v2218_v53 }
 0x22e   : > { %2010 = vmatmul.msk.f32.vlgmr.msrb.gmra.mxu1 %vm539_vm1, %v685_v8 }
 0x22f   : > { %v2228_v9 = vpop.eup %2227  ;;  %1001 = vmatpush.msrb.mxu1 %v282_v62  ;;  %v2048_v62 = vld [vmem:[%s3164_s1 + $0x3e8] sm:$0xff] }
 0x230   : > { %v686_v10 = vmul.f32 %v2228_v9, %v2220_v57  ;;  %v679_v11 = vpop.xlane.xlu2 %678 }
 0x231   : > { %2229 = vrcp.f32 %v679_v11  ;;  %1002 = vmatpush.msrb.mxu1 %v281_v63 }
 0x232   : > { %2011 = vmatmul.msk.f32.vlgmr.msra.gmra.mxu2 %vm539_vm1, %v686_v10  ;;  %2231 = vrcp.f32 %v2323_v47  ;;  %v2044_v47 = vld [vmem:[%s3164_s1 + $0x3c8] sm:$0xff] }
 0x233   : > { %1003 = vmatpush.msrb.mxu1 %v280_v0  ;;  %v2052_v0 = vld [vmem:[%s3164_s1 + $0x408] sm:$0xff] }
 0x235   : > { %1004 = vmatpush.msrb.mxu1 %v279_v3  ;;  %v2047_v3 = vld [vmem:[%s3164_s1 + $0x3e0] sm:$0xff] }
 0x237   : > { %v2230_v12 = vpop.eup %2229  ;;  %1005 = vmatpush.msrb.mxu1 %v278_v5 }
 0x238   : > { %v687_v13 = vmul.f32 %v2230_v12, %v2222_v60  ;;  %v2232_v48 = vpop.eup %2231  ;;  %v272_v60 = vld [vmem:[%s3165_s2 + $0x8] sm:$0xff]  ;;  %v959_v12 = vperm.slane %v2702_v37, 3 }
 0x239   : > { %v934_v49 = vmul.f32 32.0, %v2232_v48  ;;  %vm938_vm2 = vweird.f32 %v2232_v48  ;;  %981 = vmatpush.msrb.mxu0 %v272_v60  ;;  %1006 = vmatpush.msrb.mxu1 %v277_v19  ;;  %v2057_v60 = vld [vmem:[%s3164_s1 + $0x430] sm:$0xff] }
 0x23a   : > { %2012 = vmatmul.msk.f32.vlgmr.msra.gmra.mxu3 %vm539_vm1, %v687_v13 }
 0x23b   : > { %v935_v50 = vsub.f32 1.0, %v934_v49  ;;  %982 = vmatpush.msrb.mxu0 %v271_v61  ;;  %1007 = vmatpush.msrb.mxu1 %v276_v20  ;;  %v2035_v49 = vld [vmem:[%s3164_s1 + $0x380] sm:$0xff]  ;;  %v2077_v61 = vld [vmem:[%s3164_s1 + $0x4d0] sm:$0xff] }
 0x23d   : > { %v936_v51 = vmul.f32 %v2232_v48, %v935_v50  ;;  %1008 = vmatpush.msrb.mxu1 %v275_v21  ;;  %v2039_v50 = vld [vmem:[%s3164_s1 + $0x3a0] sm:$0xff]  ;;  %v2066_v21 = vld [vmem:[%s3164_s1 + $0x478] sm:$0xff] }
 0x23f   : > { %v937_v52 = vadd.f32 %v2232_v48, %v936_v51  ;;  %v2043_v51 = vld [vmem:[%s3164_s1 + $0x3c0] sm:$0xff] }
 0x241   : > { %v2708_v53 = vsel %vm938_vm2, %v2232_v48, %v937_v52  ;;  %v2060_v48 = vld [vmem:[%s3164_s1 + $0x448] sm:$0xff]  ;;  %v2059_v52 = vld [vmem:[%s3164_s1 + $0x440] sm:$0xff] }
 0x29a   : > { %v708_v27 = vpop.f32.mrf.mxu0 }
 0x29b   : > { %2017 = vmatmul.msk.f32.vlgmr.msra.gmra.mxu0 %vm539_vm1, %v708_v27 }
 0x2ab   : > { %v731_v28 = vpop.f32.mrf.mxu1 }
 0x2ac   : > { %2022 = vmatmul.msk.f32.vlgmr.msra.gmra.mxu1 %vm539_vm1, %v731_v28 }
 0x2b5   : > { %v754_v29 = vpop.f32.mrf.mxu2 }
 0x2b6   : > { %2027 = vmatmul.msk.f32.vlgmr.msrb.gmra.mxu2 %vm539_vm1, %v754_v29 }
 0x2bd   : > { %v777_v30 = vpop.f32.mrf.mxu3 }
 0x2be   : > { %2032 = vmatmul.msk.f32.vlgmr.msrb.gmra.mxu3 %vm539_vm1, %v777_v30 }
 0x318   : > { %v812_v32 = vpop.f32.mrf.mxu0 }
 0x319   : > { %v920_v35 = vsel %vm287_vm0, %v812_v32, 0.0 }
 0x329   : > { %v847_v31 = vpop.f32.mrf.mxu1 }
 0x32a   : > { %v921_v34 = vsel %vm287_vm0, %v847_v31, 0.0 }
 0x32b   : > { %v922_v38 = vadd.f32 %v921_v34, %v920_v35 }
 0x339   : > { %v882_v33 = vpop.f32.mrf.mxu2 }
 0x33a   : > { %v923_v36 = vsel %vm287_vm0, %v882_v33, 0.0 }
 0x33b   : > { %v924_v39 = vadd.f32 %v923_v36, %v922_v38  ;;  %v2038_v36 = vld [vmem:[%s3164_s1 + $0x398] sm:$0xff] }
 0x33c   : > { %v2042_v38 = vld [vmem:[%s3164_s1 + $0x3b8] sm:$0xff]  ;;  %1151 = vmatpush.msra.mxu2 %v2038_v36  ;;  %v2105_v36 = vld [vmem:[%s3164_s1 + $0x640] sm:$0xff] }
 0x33d   : > { %1171 = vmatpush.msra.mxu3 %v2042_v38  ;;  %v2101_v38 = vld [vmem:[%s3164_s1 + $0x5c0] sm:$0xff] }
 0x341   : > { %v917_v40 = vpop.f32.mrf.mxu3 }
 0x342   : > { %v925_v42 = vsel %vm287_vm0, %v917_v40, 0.0  ;;  %v2062_v40 = vld [vmem:[%s3164_s1 + $0x458] sm:$0xff] }
 0x343   : > { %v926_v43 = vadd.f32 %v925_v42, %v924_v39  ;;  %v2046_v39 = vld [vmem:[%s3164_s1 + $0x3d8] sm:$0xff]  ;;  %1275 = vmatpush.msra.mxu1 %v2062_v40  ;;  %v2041_v42 = vld [vmem:[%s3164_s1 + $0x3b0] sm:$0xff]  ;;  %v1134_v40 = vperm.slane %v2101_v38, 0 }
 0x344   : > { %1191 = vmatpush.msra.mxu0 %v2046_v39  ;;  %1172 = vmatpush.msra.mxu3 %v2041_v42  ;;  %v1221_v39 = vperm.slane %v2105_v36, 0 }
 0x345   : > { %v928_v44 = vadd.f32 %v927_v41, %v926_v43  ;;  %v2037_v41 = vld [vmem:[%s3164_s1 + $0x390] sm:$0xff] }
 0x346   : > { %v2045_v43 = vld [vmem:[%s3164_s1 + $0x3d0] sm:$0xff]  ;;  %1152 = vmatpush.msra.mxu2 %v2037_v41 }
 0x347   : > { %v929_v45 = vadd.f32 %v928_v44, %v2450_v16  ;;  %v2061_v44 = vld [vmem:[%s3164_s1 + $0x450] sm:$0xff]  ;;  %1192 = vmatpush.msra.mxu0 %v2045_v43 }
 0x348   : > { %1276 = vmatpush.msra.mxu1 %v2061_v44  ;;  %v2104_v44 = vld [vmem:[%s3164_s1 + $0x620] sm:$0xff] }
 0x349   : > { %v930_v46 = vsel %vm287_vm0, %v929_v45, 0.0  ;;  %1193 = vmatpush.msra.mxu0 %v2044_v47 }
 0x34a   : > { %931 = vadd.xlane.f32.xlu2 %v930_v46  ;;  %v2040_v46 = vld [vmem:[%s3164_s1 + $0x3a8] sm:$0xff]  ;;  %1277 = vmatpush.msra.mxu1 %v2060_v48  ;;  %v2100_v48 = vld [vmem:[%s3164_s1 + $0x5a0] sm:$0xff] }
 0x34b   : > { %1173 = vmatpush.msra.mxu3 %v2040_v46  ;;  %1194 = vmatpush.msra.mxu0 %v2043_v51 }
 0x34c   : > { %1278 = vmatpush.msra.mxu1 %v2059_v52  ;;  %v2103_v52 = vld [vmem:[%s3164_s1 + $0x600] sm:$0xff] }
 0x34d   : > { %1174 = vmatpush.msra.mxu3 %v2039_v50  ;;  %v1220_v50 = vperm.slane %v2104_v44, 0 }
 0x3bd   : > { %v932_v54 = vpop.xlane.xlu2 %931 }
 0x3be   : > { %v940_v55 = vmul.f32 %v2708_v53, %v932_v54  ;;  %v2050_v54 = vld [vmem:[%s3164_s1 + $0x3f8] sm:$0xff] }
 0x3c0   : > { %v941_v56 = vsub.f32 %v929_v45, %v940_v55  ;;  %v2036_v45 = vld [vmem:[%s3164_s1 + $0x388] sm:$0xff]  ;;  %v2054_v55 = vld [vmem:[%s3164_s1 + $0x418] sm:$0xff] }
 0x3c1   : > { %1153 = vmatpush.msra.mxu2 %v2036_v45  ;;  %1235 = vmatpush.msrb.mxu3 %v2054_v55  ;;  %v2109_v45 = vld [vmem:[%s3164_s1 + $0x6c0] sm:$0xff] }
 0x3c2   : > { %v942_v57 = vmul.f32 %v941_v56, %v941_v56  ;;  %v1305_v51 = vperm.slane %v2109_v45, 0 }
 0x3c3   : > { %1154 = vmatpush.msra.mxu2 %v2035_v49  ;;  %1236 = vmatpush.msrb.mxu3 %v2053_v58  ;;  %v2099_v58 = vld [vmem:[%s3164_s1 + $0x580] sm:$0xff] }
 0x3c4   : > { %v943_v16 = vsel %vm287_vm0, %v942_v57, 0.0  ;;  %v2078_v57 = vld [vmem:[%s3164_s1 + $0x4d8] sm:$0xff] }
 0x3c5   : > { %944 = vadd.xlane.f32.xlu0 %v943_v16  ;;  %1211 = vmatpush.msrb.mxu2 %v2050_v54  ;;  %v2049_v16 = vld [vmem:[%s3164_s1 + $0x3f0] sm:$0xff]  ;;  %v1133_v54 = vperm.slane %v2100_v48, 0 }
 0x3c6   : > { %1237 = vmatpush.msrb.mxu3 %v2052_v0 }
 0x3c7   : > { %1212 = vmatpush.msrb.mxu2 %v2049_v16 }
 0x3c9   : > { %1213 = vmatpush.msrb.mxu2 %v2048_v62  ;;  %v1132_v62 = vperm.slane %v2099_v58, 0 }
 0x3cb   : > { %1214 = vmatpush.msrb.mxu2 %v2047_v3  ;;  %v2106_v3 = vld [vmem:[%s3164_s1 + $0x660] sm:$0xff] }
 0x438   : > { %v945_v1 = vpop.xlane.xlu0 %944 }
 0x439   : > { %v946_v2 = vmul.f32 %v945_v1, %v2708_v53  ;;  %v2056_v1 = vld [vmem:[%s3164_s1 + $0x428] sm:$0xff] }
 0x43b   : > { %v947_v4 = vadd.f32 1e-05, %v946_v2  ;;  %v2076_v2 = vld [vmem:[%s3164_s1 + $0x4c8] sm:$0xff] }
 0x43d   : > { %2233 = vrsqrt.f32 %v947_v4  ;;  %vm954_vm4 = vweird.f32 %v947_v4 }
 0x443   : > { %v2234_v6 = vpop.eup %2233 }
 0x444   : > { %v949_v7 = vmul.f32 %v2234_v6, %v947_v4  ;;  %vm955_vm3 = vweird.f32 %v2234_v6  ;;  %v2051_v4 = vld [vmem:[%s3164_s1 + $0x400] sm:$0xff] }
 0x445   : > { %vm956_vm5 = vmor %vm954_vm4, %vm955_vm3  ;;  %1238 = vmatpush.msrb.mxu3 %v2051_v4  ;;  %v2107_v4 = vld [vmem:[%s3164_s1 + $0x680] sm:$0xff] }
 0x446   : > { %v950_v8 = vmul.f32 %v2234_v6, %v949_v7  ;;  %v2075_v7 = vld [vmem:[%s3164_s1 + $0x4c0] sm:$0xff] }
 0x448   : > { %v951_v9 = vmul.f32 0.5, %v950_v8 }
 0x44a   : > { %v952_v10 = vsub.f32 1.5, %v951_v9 }
 0x44c   : > { %v953_v11 = vmul.f32 %v2234_v6, %v952_v10 }
 0x44e   : > { %v957_v13 = vsel %vm956_vm5, %v2234_v6, %v953_v11  ;;  %v2055_v6 = vld [vmem:[%s3164_s1 + $0x420] sm:$0xff] }
 0x44f   : > { %v958_v14 = vmul.f32 %v957_v13, %v941_v56  ;;  %v2058_v56 = vld [vmem:[%s3164_s1 + $0x438] sm:$0xff] }
 0x451   : > { %v960_v17 = vmul.f32 %v959_v12, %v958_v14  ;;  %v1036_v14 = vperm.slane %v2702_v37, 5 }
 0x453   : > { %v962_v18 = vadd.f32 %v961_v15, %v960_v17  ;;  %v1038_v17 = vperm.slane %v2702_v37, 6  ;;  %v2074_v37 = vld [vmem:[%s3164_s1 + $0x4b8] sm:$0xff] }
 0x455   : > { %2033 = vmatmul.msk.f32.vlgmr.msrb.gmra.mxu0 %vm287_vm0, %v962_v18 }
 0x456   : > { %1255 = vmatpush.msrb.mxu0 %v2058_v56 }
 0x458   : > { %1256 = vmatpush.msrb.mxu0 %v2057_v60  ;;  %v2108_v60 = vld [vmem:[%s3164_s1 + $0x6a0] sm:$0xff] }
 0x45a   : > { %1257 = vmatpush.msrb.mxu0 %v2056_v1  ;;  %v1304_v1 = vperm.slane %v2108_v60, 0 }
 0x45c   : > { %1258 = vmatpush.msrb.mxu0 %v2055_v6 }
 0x4d2   : > { %v984_v23 = vpop.f32.mrf.mxu0 }
 0x4d3   : > { %v985_v24 = vadd.f32 %v984_v23, %v963_v22  ;;  %v2070_v22 = vld [vmem:[%s3164_s1 + $0x498] sm:$0xff]  ;;  %v2065_v23 = vld [vmem:[%s3164_s1 + $0x470] sm:$0xff] }
 0x4d5   : > { %v987_v25 = vmax.f32 %v985_v24, 0.0  ;;  %v2069_v24 = vld [vmem:[%s3164_s1 + $0x490] sm:$0xff] }
 0x4d7   : > { %2034 = vmatmul.msk.f32.vlgmr.msrb.gmra.mxu1 %vm989_vm6, %v987_v25  ;;  %v2073_v25 = vld [vmem:[%s3164_s1 + $0x4b0] sm:$0xff] }
 0x4d8   : > { %1359 = vmatpush.msrb.mxu1 %v2078_v57 }
 0x4da   : > { %1360 = vmatpush.msrb.mxu1 %v2077_v61 }
 0x4dc   : > { %1361 = vmatpush.msrb.mxu1 %v2076_v2 }
 0x4de   : > { %1362 = vmatpush.msrb.mxu1 %v2075_v7 }
 0x554   : > { %v1010_v27 = vpop.f32.mrf.mxu1 }
 0x555   : > { %v1011_v28 = vadd.f32 %v1010_v27, %v988_v26  ;;  %v2064_v26 = vld [vmem:[%s3164_s1 + $0x468] sm:$0xff] }
 0x556   : > { %v2068_v27 = vld [vmem:[%s3164_s1 + $0x488] sm:$0xff] }
 0x557   : > { %v1013_v29 = vadd.f32 %v1011_v28, %v962_v18  ;;  %v2072_v28 = vld [vmem:[%s3164_s1 + $0x4a8] sm:$0xff] }
 0x559   : > { %v1014_v30 = vsel %vm287_vm0, %v1013_v29, 0.0 }
 0x55a   : > { %1015 = vadd.xlane.f32.xlu1 %v1014_v30  ;;  %v2067_v30 = vld [vmem:[%s3164_s1 + $0x480] sm:$0xff] }
 0x5cd   : > { %v1016_v31 = vpop.xlane.xlu1 %1015 }
 0x5ce   : > { %v1017_v32 = vmul.f32 %v1016_v31, %v2708_v53  ;;  %v2071_v31 = vld [vmem:[%s3164_s1 + $0x4a0] sm:$0xff] }
 0x5d0   : > { %v2757_v33 = vsub.f32 %v1013_v29, %v1017_v32  ;;  %v2063_v29 = vld [vmem:[%s3164_s1 + $0x460] sm:$0xff]  ;;  %v2082_v32 = vld [vmem:[%s3164_s1 + $0x4f8] sm:$0xff] }
 0x5d2   : > { %v1019_v34 = vmul.f32 %v2757_v33, %v2757_v33 }
 0x5d4   : > { %v1020_v35 = vsel %vm287_vm0, %v1019_v34, 0.0  ;;  %v2080_v34 = vld [vmem:[%s3164_s1 + $0x4e8] sm:$0xff] }
 0x5d5   : > { %1021 = vadd.xlane.f32.xlu2 %v1020_v35  ;;  %v2079_v35 = vld [vmem:[%s3164_s1 + $0x4e0] sm:$0xff] }
 0x648   : > { %v1022_v59 = vpop.xlane.xlu2 %1021 }
 0x649   : > { %v1023_v63 = vmul.f32 %v1022_v59, %v2708_v53  ;;  %v1219_v59 = vperm.slane %v2103_v52, 0 }
 0x64b   : > { %v1024_v5 = vadd.f32 1e-05, %v1023_v63 }
 0x64d   : > { %2235 = vrsqrt.f32 %v1024_v5  ;;  %vm1031_vm8 = vweird.f32 %v1024_v5 }
 0x653   : > { %v2236_v8 = vpop.eup %2235 }
 0x654   : > { %v1026_v9 = vmul.f32 %v2236_v8, %v1024_v5  ;;  %vm1032_vm7 = vweird.f32 %v2236_v8 }
 0x655   : > { %vm1033_vm9 = vmor %vm1031_vm8, %vm1032_vm7 }
 0x656   : > { %v1027_v10 = vmul.f32 %v2236_v8, %v1026_v9  ;;  %v1222_v9 = vperm.slane %v2106_v3, 0  ;;  %v2086_v3 = vld [vmem:[%s3164_s1 + $0x518] sm:$0xff] }
 0x658   : > { %v1028_v11 = vmul.f32 0.5, %v1027_v10  ;;  %v1303_v10 = vperm.slane %v2107_v4, 0  ;;  %v2094_v4 = vld [vmem:[%s3164_s1 + $0x558] sm:$0xff] }
 0x65a   : > { %v1029_v12 = vsub.f32 1.5, %v1028_v11 }
 0x65c   : > { %v1030_v13 = vmul.f32 %v2236_v8, %v1029_v12 }
 0x65e   : > { %v1034_v15 = vsel %vm1033_vm9, %v2236_v8, %v1030_v13  ;;  %v2102_v8 = vld [vmem:[%s3164_s1 + $0x5e0] sm:$0xff] }
 0x65f   : > { %v1035_v18 = vmul.f32 %v1034_v15, %v2757_v33  ;;  %v2081_v33 = vld [vmem:[%s3164_s1 + $0x4f0] sm:$0xff]  ;;  %v1135_v11 = vperm.slane %v2102_v8, 0 }
 0x660   : > { %v2097_v8 = vld [vmem:[%s3164_s1 + $0x570] sm:$0xff] }
 0x661   : > { %v1037_v19 = vmul.f32 %v1036_v14, %v1035_v18 }
 0x663   : > { %v2862_v20 = vadd.f32 %v1038_v17, %v1037_v19  ;;  %v2110_v17 = vld [vmem:[%s3164_s1 + $0x6e0] sm:$0xff] }
 0x664   : > { %v1306_v19 = vperm.slane %v2110_v17, 0 }
 0x665   : > { %2124 = vmatmul.msk.f32.vlgmr.msra.gmra.mxu2 %vm287_vm0, %v2862_v20  ;;  %2125 = vmatmul.msk.f32.vlgmr.msra.gmra.mxu3 %vm287_vm0, %v2862_v20 }
 0x666   : > { %2126 = vmatmul.msk.f32.vlgmr.msra.gmra.mxu0 %vm287_vm0, %v2862_v20  ;;  %2130 = vmatmul.msk.f32.vlgmr.msra.gmra.mxu1 %vm287_vm0, %v2862_v20 }
 0x667   : > { %1295 = vmatpush.msra.mxu2 %v2066_v21  ;;  %1319 = vmatpush.msra.mxu3 %v2070_v22 }
 0x668   : > { %1339 = vmatpush.msra.mxu0 %v2074_v37 }
 0x669   : > { %1296 = vmatpush.msra.mxu2 %v2065_v23  ;;  %1320 = vmatpush.msra.mxu3 %v2069_v24 }
 0x66a   : > { %1340 = vmatpush.msra.mxu0 %v2073_v25 }
 0x66b   : > { %1297 = vmatpush.msra.mxu2 %v2064_v26  ;;  %1321 = vmatpush.msra.mxu3 %v2068_v27 }
 0x66c   : > { %1341 = vmatpush.msra.mxu0 %v2072_v28 }
 0x66d   : > { %2127 = vmatmul.msk.f32.vlgmr.msrb.gmra.mxu2 %vm287_vm0, %v2862_v20  ;;  %2128 = vmatmul.msk.f32.vlgmr.msrb.gmra.mxu3 %vm287_vm0, %v2862_v20 }
 0x66e   : > { %2129 = vmatmul.msk.f32.vlgmr.msrb.gmra.mxu0 %vm287_vm0, %v2862_v20  ;;  %2134 = vmatmul.msk.f32.vlgmr.msrb.gmra.mxu1 %vm287_vm0, %v2862_v20 }
 0x66f   : > { %1298 = vmatpush.msra.mxu2 %v2063_v29  ;;  %1322 = vmatpush.msra.mxu3 %v2067_v30 }
 0x670   : > { %1342 = vmatpush.msra.mxu0 %v2071_v31 }
 0x671   : > { %1379 = vmatpush.msrb.mxu2 %v2082_v32 }
 0x673   : > { %1380 = vmatpush.msrb.mxu2 %v2081_v33 }
 0x675   : > { %1381 = vmatpush.msrb.mxu2 %v2080_v34  ;;  %2132 = vmatmul.msk.f32.vlgmr.msra.gmra.mxu3 %vm287_vm0, %v2862_v20 }
 0x676   : > { %2131 = vmatmul.msk.f32.vlgmr.msra.gmra.mxu2 %vm287_vm0, %v2862_v20  ;;  %2133 = vmatmul.msk.f32.vlgmr.msra.gmra.mxu0 %vm287_vm0, %v2862_v20 }
 0x677   : > { %1382 = vmatpush.msrb.mxu2 %v2079_v35 }
 0x67e   : > { %2135 = vmatmul.msk.f32.vlgmr.msrb.gmra.mxu2 %vm287_vm0, %v2862_v20 }
 0x6e3   : > { %v1196_v41 = vpop.f32.mrf.mxu0  ;;  %v1280_v42 = vpop.f32.mrf.mxu1 }
 0x6e4   : > { %v1281_v43 = vadd.f32 %v1280_v42, %v1221_v39  ;;  %v1197_v46 = vadd.f32 %v1196_v41, %v1134_v40 }
 0x6e6   : > { %2140 = vmatpush.xpose.msk.msra.mxu1 %vm539_vm1, %v1281_v43 }
 0x6e8   : > { %v1156_v47 = vpop.f32.mrf.mxu2  ;;  %v1176_v49 = vpop.f32.mrf.mxu3 }
 0x6e9   : > { %2141 = vmatmul.msk.f32.vlgmr.msra.gmra.mxu1 %vm539_vm1, %v1197_v46  ;;  %v1177_v61 = vadd.f32 %v1176_v49, %v1133_v54  ;;  %v1157_v6 = vadd.f32 %v1156_v47, %v1132_v62  ;;  %v2089_v54 = vld [vmem:[%s3164_s1 + $0x530] sm:$0xff] }
 0x6eb   : > { %v1260_v55 = vpop.f32.mrf.mxu0  ;;  %v1364_v56 = vpop.f32.mrf.mxu1 }
 0x6ec   : > { %v1261_v57 = vadd.f32 %v1260_v55, %v1220_v50  ;;  %v1365_v16 = vadd.f32 %v1364_v56, %v1305_v51  ;;  %v2090_v51 = vld [vmem:[%s3164_s1 + $0x538] sm:$0xff]  ;;  %v2088_v55 = vld [vmem:[%s3164_s1 + $0x528] sm:$0xff] }
 0x6ee   : > { %2138 = vmatpush.xpose.msk.msrb.mxu0 %vm539_vm1, %v1261_v57  ;;  %1599 = vmatpush.msrb.mxu1 %v1365_v16  ;;  %v2087_v16 = vld [vmem:[%s3164_s1 + $0x520] sm:$0xff] }
 0x6f0   : > { %v1216_v63 = vpop.f32.mrf.mxu2  ;;  %v1240_v0 = vpop.f32.mrf.mxu3  ;;  %2158 = vmatpush.xpose.msk.msra.mxu1 %vm539_vm1, %v2094_v4 }
 0x6f1   : > { %v1241_v2 = vadd.f32 %v1240_v0, %v1219_v59  ;;  %2139 = vmatmul.msk.f32.vlgmr.msrb.gmra.mxu0 %vm539_vm1, %v1177_v61  ;;  %v1217_v18 = vadd.f32 %v1216_v63, %v1135_v11  ;;  %v2083_v11 = vld [vmem:[%s3164_s1 + $0x500] sm:$0xff] }
 0x6f3   : > { %v1344_v5 = vpop.f32.mrf.mxu0  ;;  %2136 = vmatpush.xpose.msk.msrb.mxu3 %vm539_vm1, %v1241_v2 }
 0x6f4   : > { %v1345_v7 = vadd.f32 %v1344_v5, %v1304_v1  ;;  %v2098_v5 = vld [vmem:[%s3164_s1 + $0x578] sm:$0xff] }
 0x6f6   : > { %1576 = vmatpush.msra.mxu0 %v1345_v7  ;;  %2137 = vmatmul.msk.f32.vlgmr.msrb.gmra.mxu3 %vm539_vm1, %v1157_v6  ;;  %v2085_v6 = vld [vmem:[%s3164_s1 + $0x510] sm:$0xff] }
 0x6f7   : > { %v2093_v7 = vld [vmem:[%s3164_s1 + $0x550] sm:$0xff] }
 0x6f8   : > { %v1324_v13 = vpop.f32.mrf.mxu3  ;;  %2153 = vmatpush.xpose.msk.msrb.mxu0 %vm539_vm1, %v2090_v51  ;;  %2159 = vmatpush.xpose.msk.msra.mxu1 %vm539_vm1, %v2093_v7 }
 0x6f9   : > { %v1300_v12 = vpop.f32.mrf.mxu2  ;;  %v1325_v15 = vadd.f32 %v1324_v13, %v1303_v10  ;;  %v2092_v10 = vld [vmem:[%s3164_s1 + $0x548] sm:$0xff] }
 0x6fa   : > { %v1301_v14 = vadd.f32 %v1300_v12, %v1222_v9  ;;  %v2084_v9 = vld [vmem:[%s3164_s1 + $0x508] sm:$0xff]  ;;  %v2091_v12 = vld [vmem:[%s3164_s1 + $0x540] sm:$0xff] }
 0x6fb   : > { %1553 = vmatpush.msra.mxu3 %v1325_v15  ;;  %v2096_v13 = vld [vmem:[%s3164_s1 + $0x568] sm:$0xff] }
 0x6fc   : > { %2142 = vmatpush.xpose.msk.msra.mxu2 %vm539_vm1, %v1301_v14  ;;  %2154 = vmatpush.xpose.msk.msrb.mxu0 %vm539_vm1, %v2089_v54  ;;  %v2095_v14 = vld [vmem:[%s3164_s1 + $0x560] sm:$0xff] }
 0x6fd   : > { %2148 = vmatpush.xpose.msk.msrb.mxu3 %vm539_vm1, %v2086_v3  ;;  %2160 = vmatpush.xpose.msk.msra.mxu1 %vm539_vm1, %v2092_v10  ;;  %v2116_v3 = vld [vmem:[%s3165_s2 + $0x80] sm:$0xff] }
 0x6ff   : > { %2143 = vmatmul.msk.f32.vlgmr.msra.gmra.mxu2 %vm539_vm1, %v1217_v18 }
 0x700   : > { %2155 = vmatpush.xpose.msk.msrb.mxu0 %vm539_vm1, %v2088_v55 }
 0x701   : > { %v1384_v21 = vpop.f32.mrf.mxu2  ;;  %2149 = vmatpush.xpose.msk.msrb.mxu3 %vm539_vm1, %v2085_v6  ;;  %2161 = vmatpush.xpose.msk.msra.mxu1 %vm539_vm1, %v2091_v12 }
 0x702   : > { %v1385_v22 = vadd.f32 %v1384_v21, %v1306_v19 }
 0x704   : > { %1622 = vmatpush.msrb.mxu2 %v1385_v22  ;;  %2156 = vmatpush.xpose.msk.msrb.mxu0 %vm539_vm1, %v2087_v16 }
 0x705   : > { %2150 = vmatpush.xpose.msk.msrb.mxu3 %vm539_vm1, %v2084_v9 }
 0x706   : > { %2163 = vmatpush.xpose.msk.msra.mxu2 %vm539_vm1, %v2098_v5 }
 0x709   : > { %2151 = vmatpush.xpose.msk.msrb.mxu3 %vm539_vm1, %v2083_v11 }
 0x70a   : > { %2164 = vmatpush.xpose.msk.msra.mxu2 %vm539_vm1, %v2097_v8 }
 0x70e   : > { %2165 = vmatpush.xpose.msk.msra.mxu2 %vm539_vm1, %v2096_v13 }
 0x712   : > { %2166 = vmatpush.xpose.msk.msra.mxu2 %vm539_vm1, %v2095_v14 }
 0x766   : > { %v1462_v26 = vpop.f32.mrf.mxu1 }
 0x767   : > { %v1497_v29 = vsel %vm539_vm1, %v1462_v26, -inf }
 0x76e   : > { %v1436_v37 = vpop.f32.mrf.mxu0 }
 0x76f   : > { %v1494_v23 = vsel %vm539_vm1, %v1436_v37, -inf }
 0x770   : > { %1495 = vmax.xlane.f32.xlu2 %v1494_v23 }
 0x779   : > { %v1410_v24 = vpop.f32.mrf.mxu3 }
 0x77a   : > { %v1491_v25 = vsel %vm539_vm1, %v1410_v24, -inf }
 0x77b   : > { %1492 = vmax.xlane.f32.xlu0 %v1491_v25 }
 0x782   : > { %v1488_v27 = vpop.f32.mrf.mxu2 }
 0x783   : > { %v1500_v28 = vsel %vm539_vm1, %v1488_v27, -inf  ;;  %1498 = vmax.xlane.f32.xlu0 %v1497_v29 }
 0x784   : > { %1501 = vmax.xlane.f32.xlu1 %v1500_v28 }
 0x7e3   : > { %v1496_v30 = vpop.xlane.xlu2 %1495 }
 0x7e4   : > { %v1504_v31 = vsub.f32 %v1436_v37, %v1496_v30 }
 0x7e6   : > { %v1509_v32 = vmul.f32 1.442695, %v1504_v31 }
 0x7e8   : > { %2237 = vpow2.f32 %v1509_v32 }
 0x7ee   : > { %v2238_v33 = vpop.eup %2237  ;;  %v1493_v34 = vpop.xlane.xlu0 %1492 }
 0x7ef   : > { %v1503_v35 = vsub.f32 %v1410_v24, %v1493_v34  ;;  %v1518_v36 = vsel %vm539_vm1, %v2238_v33, 0.0 }
 0x7f0   : > { %1519 = vadd.xlane.f32.xlu0 %v1518_v36 }
 0x7f1   : > { %v1507_v38 = vmul.f32 1.442695, %v1503_v35 }
 0x7f3   : > { %2239 = vpow2.f32 %v1507_v38 }
 0x7f6   : > { %v1499_v40 = vpop.xlane.xlu0 %1498 }
 0x7f7   : > { %v1502_v39 = vpop.xlane.xlu1 %1501  ;;  %v1505_v42 = vsub.f32 %v1462_v26, %v1499_v40  ;;  %v3065_v26 = vld [vmem:[%s3166_s3 + $0x8] sm:$0xff] }
 0x7f8   : > { %v1506_v41 = vsub.f32 %v1488_v27, %v1502_v39  ;;  %v1774_v30 = vperm.slane %v3065_v26, 0  ;;  %v1803_v4 = vperm.slane %v3065_v26, 1  ;;  %v1828_v8 = vperm.slane %v3065_v26, 2 }
 0x7f9   : > { %v2240_v43 = vpop.eup %2239  ;;  %v1511_v45 = vmul.f32 1.442695, %v1505_v42  ;;  %v2115_v42 = vld [vmem:[%s3165_s2 + $0x78] sm:$0xff] }
 0x7fa   : > { %v1513_v44 = vmul.f32 1.442695, %v1506_v41  ;;  %v1515_v46 = vsel %vm539_vm1, %v2240_v43, 0.0 }
 0x7fb   : > { %1516 = vadd.xlane.f32.xlu1 %v1515_v46  ;;  %v2122_v46 = vld [vmem:[%s3165_s2 + $0xb0] sm:$0xff] }
 0x7fc   : > { %2241 = vpow2.f32 %v1513_v44  ;;  %v2112_v44 = vld [vmem:[%s3165_s2 + $0x60] sm:$0xff] }
 0x7fd   : > { %2243 = vpow2.f32 %v1511_v45  ;;  %v2123_v45 = vld [vmem:[%s3165_s2 + $0xb8] sm:$0xff] }
 0x802   : > { %v2242_v47 = vpop.eup %2241 }
 0x803   : > { %v2244_v48 = vpop.eup %2243  ;;  %v1524_v49 = vsel %vm539_vm1, %v2242_v47, 0.0 }
 0x804   : > { %1525 = vadd.xlane.f32.xlu2 %v1524_v49  ;;  %v1521_v50 = vsel %vm539_vm1, %v2244_v48, 0.0 }
 0x805   : > { %1522 = vadd.xlane.f32.xlu1 %v1521_v50  ;;  %v2120_v50 = vld [vmem:[%s3165_s2 + $0xa0] sm:$0xff] }
 0x863   : > { %v1520_v52 = vpop.xlane.xlu0 %1519 }
 0x864   : > { %2245 = vrcp.f32 %v1520_v52  ;;  %v2119_v52 = vld [vmem:[%s3165_s2 + $0x98] sm:$0xff] }
 0x86a   : > { %v2246_v56 = vpop.eup %2245 }
 0x86b   : > { %v1532_v57 = vmul.f32 %v2246_v56, %v2238_v33 }
 0x86d   : > { %2145 = vmatmul.msk.f32.vlgmr.msra.gmra.mxu0 %vm539_vm1, %v1532_v57 }
 0x86e   : > { %v1517_v58 = vpop.xlane.xlu1 %1516  ;;  %1840 = vmatpush.msra.mxu0 %v2123_v45 }
 0x86f   : > { %2247 = vrcp.f32 %v1517_v58 }
 0x870   : > { %1841 = vmatpush.msra.mxu0 %v2122_v46 }
 0x875   : > { %v2248_v59 = vpop.eup %2247 }
 0x876   : > { %v1531_v60 = vmul.f32 %v2248_v59, %v2240_v43  ;;  %v2113_v43 = vld [vmem:[%s3165_s2 + $0x68] sm:$0xff]  ;;  %v1799_v59 = vperm.slane %v3065_v26, 3 }
 0x877   : > { %v1526_v61 = vpop.xlane.xlu2 %1525 }
 0x878   : > { %2249 = vrcp.f32 %v1526_v61  ;;  %v1523_v62 = vpop.xlane.xlu1 %1522  ;;  %2144 = vmatmul.msk.f32.vlgmr.msra.gmra.mxu3 %vm539_vm1, %v1531_v60 }
 0x879   : > { %2251 = vrcp.f32 %v1523_v62  ;;  %1819 = vmatpush.msra.mxu3 %v2115_v42  ;;  %v1801_v62 = vperm.slane %v3065_v26, 4 }
 0x87e   : > { %v2250_v63 = vpop.eup %2249 }
 0x87f   : > { %v2252_v0 = vpop.eup %2251  ;;  %v1534_v1 = vmul.f32 %v2250_v63, %v2242_v47  ;;  %v2121_v47 = vld [vmem:[%s3165_s2 + $0xa8] sm:$0xff] }
 0x880   : > { %v1533_v2 = vmul.f32 %v2252_v0, %v2244_v48  ;;  %1842 = vmatpush.msra.mxu0 %v2121_v47 }
 0x881   : > { %2147 = vmatmul.msk.f32.vlgmr.msrb.gmra.mxu2 %vm539_vm1, %v1534_v1  ;;  %v2118_v1 = vld [vmem:[%s3165_s2 + $0x90] sm:$0xff] }
 0x882   : > { %2146 = vmatmul.msk.f32.vlgmr.msrb.gmra.mxu1 %vm539_vm1, %v1533_v2  ;;  %1843 = vmatpush.msra.mxu0 %v2120_v50  ;;  %v2117_v2 = vld [vmem:[%s3165_s2 + $0x88] sm:$0xff] }
 0x884   : > { %1844 = vmatpush.msra.mxu0 %v2119_v52 }
 0x886   : > { %1845 = vmatpush.msra.mxu0 %v2118_v1 }
 0x888   : > { %1846 = vmatpush.msra.mxu0 %v2117_v2 }
 0x88a   : > { %1847 = vmatpush.msra.mxu0 %v2116_v3 }
 0x8ea   : > { %v1578_v15 = vpop.f32.mrf.mxu0 }
 0x8eb   : > { %2157 = vmatmul.msk.f32.vlgmr.msrb.gmra.mxu0 %vm539_vm1, %v1578_v15 }
 0x8fb   : > { %v1555_v17 = vpop.f32.mrf.mxu3 }
 0x8fc   : > { %2152 = vmatmul.msk.f32.vlgmr.msrb.gmra.mxu3 %vm539_vm1, %v1555_v17 }
 0x8ff   : > { %v1601_v18 = vpop.f32.mrf.mxu1 }
 0x900   : > { %2162 = vmatmul.msk.f32.vlgmr.msra.gmra.mxu1 %vm539_vm1, %v1601_v18 }
 0x904   : > { %v1624_v19 = vpop.f32.mrf.mxu2 }
 0x905   : > { %2167 = vmatmul.msk.f32.vlgmr.msra.gmra.mxu2 %vm539_vm1, %v1624_v19 }
 0x968   : > { %v1694_v21 = vpop.f32.mrf.mxu0 }
 0x969   : > { %v1768_v23 = vsel %vm287_vm0, %v1694_v21, 0.0 }
 0x97d   : > { %v1729_v24 = vpop.f32.mrf.mxu1 }
 0x97e   : > { %v1770_v27 = vsel %vm287_vm0, %v1729_v24, 0.0 }
 0x97f   : > { %v1659_v22 = vpop.f32.mrf.mxu3 }
 0x980   : > { %v1767_v37 = vsel %vm287_vm0, %v1659_v22, 0.0 }
 0x981   : > { %v1769_v25 = vadd.f32 %v1768_v23, %v1767_v37 }
 0x983   : > { %v1771_v29 = vadd.f32 %v1770_v27, %v1769_v25 }
 0x988   : > { %v1764_v28 = vpop.f32.mrf.mxu2 }
 0x989   : > { %v1772_v31 = vsel %vm287_vm0, %v1764_v28, 0.0 }
 0x98a   : > { %v1773_v32 = vadd.f32 %v1772_v31, %v1771_v29  ;;  %v1875_v29 = vperm.slane %v3065_v26, 5 }
 0x98c   : > { %v1775_v33 = vadd.f32 %v1774_v30, %v1773_v32  ;;  %v1877_v32 = vperm.slane %v3065_v26, 6 }
 0x98e   : > { %v1776_v34 = vadd.f32 %v1775_v33, %v2862_v20  ;;  %v2114_v20 = vld [vmem:[%s3165_s2 + $0x70] sm:$0xff] }
 0x98f   : > { %1820 = vmatpush.msra.mxu3 %v2114_v20 }
 0x990   : > { %v1777_v35 = vsel %vm287_vm0, %v1776_v34, 0.0 }
 0x991   : > { %1778 = vadd.xlane.f32.xlu2 %v1777_v35  ;;  %1821 = vmatpush.msra.mxu3 %v2113_v43 }
 0x993   : > { %1822 = vmatpush.msra.mxu3 %v2112_v44 }
 0xa04   : > { %v1779_v36 = vpop.xlane.xlu2 %1778 }
 0xa05   : > { %v1780_v38 = vmul.f32 %v1779_v36, %v2708_v53 }
 0xa07   : > { %v1781_v39 = vsub.f32 %v1776_v34, %v1780_v38 }
 0xa09   : > { %v1782_v40 = vmul.f32 %v1781_v39, %v1781_v39 }
 0xa0b   : > { %v1783_v41 = vsel %vm287_vm0, %v1782_v40, 0.0 }
 0xa0c   : > { %1784 = vadd.xlane.f32.xlu0 %v1783_v41 }
 0xa7f   : > { %v1785_v48 = vpop.xlane.xlu0 %1784 }
 0xa80   : > { %v1786_v49 = vmul.f32 %v1785_v48, %v2708_v53  ;;  %v2170_v48 = vld [vmem:[%s3166_s3 + $0x10] sm:$0xff] }
 0xa81   : > { %v1903_v50 = vperm.slane %v2170_v48, 0  ;;  %v1905_v52 = vperm.slane %v2170_v48, 1 }
 0xa82   : > { %v1787_v51 = vadd.f32 1e-05, %v1786_v49 }
 0xa84   : > { %2253 = vrsqrt.f32 %v1787_v51  ;;  %vm1794_vm11 = vweird.f32 %v1787_v51 }
 0xa8a   : > { %v2254_v54 = vpop.eup %2253 }
 0xa8b   : > { %v1789_v55 = vmul.f32 %v2254_v54, %v1787_v51  ;;  %vm1795_vm10 = vweird.f32 %v2254_v54 }
 0xa8c   : > { %vm1796_vm12 = vmor %vm1794_vm11, %vm1795_vm10 }
 0xa8d   : > { %v1790_v56 = vmul.f32 %v2254_v54, %v1789_v55 }
 0xa8f   : > { %v1791_v57 = vmul.f32 0.5, %v1790_v56 }
 0xa91   : > { %v1792_v16 = vsub.f32 1.5, %v1791_v57 }
 0xa93   : > { %v1793_v58 = vmul.f32 %v2254_v54, %v1792_v16 }
 0xa95   : > { %v1797_v60 = vsel %vm1796_vm12, %v2254_v54, %v1793_v58 }
 0xa96   : > { %v1798_v61 = vmul.f32 %v1797_v60, %v1781_v39 }
 0xa98   : > { %v1800_v63 = vmul.f32 %v1799_v59, %v1798_v61 }
 0xa9a   : > { %v1802_v0 = vadd.f32 %v1801_v62, %v1800_v63 }
 0xa9c   : > { %2168 = vmatmul.msk.f32.vlgmr.msra.gmra.mxu3 %vm287_vm0, %v1802_v0 }
 0xb1f   : > { %v1824_v5 = vpop.f32.mrf.mxu3 }
 0xb20   : > { %v1825_v6 = vadd.f32 %v1824_v5, %v1803_v4 }
 0xb22   : > { %v1827_v7 = vmax.f32 %v1825_v6, 0.0 }
 0xb24   : > { %2169 = vmatmul.msk.f32.vlgmr.msra.gmra.mxu0 %vm989_vm6, %v1827_v7 }
 0xba1   : > { %v1849_v9 = vpop.f32.mrf.mxu0 }
 0xba2   : > { %v1850_v10 = vadd.f32 %v1849_v9, %v1828_v8 }
 0xba4   : > { %v1852_v11 = vadd.f32 %v1850_v10, %v1802_v0 }
 0xba6   : > { %v1853_v12 = vsel %vm287_vm0, %v1852_v11, 0.0 }
 0xba7   : > { %1854 = vadd.xlane.f32.xlu1 %v1853_v12 }
 0xc1a   : > { %v1855_v13 = vpop.xlane.xlu1 %1854 }
 0xc1b   : > { %v1856_v14 = vmul.f32 %v1855_v13, %v2708_v53 }
 0xc1d   : > { %v1857_v15 = vsub.f32 %v1852_v11, %v1856_v14 }
 0xc1f   : > { %v1858_v17 = vmul.f32 %v1857_v15, %v1857_v15 }
 0xc21   : > { %v1859_v18 = vsel %vm287_vm0, %v1858_v17, 0.0 }
 0xc22   : > { %1860 = vadd.xlane.f32.xlu2 %v1859_v18 }
 0xc95   : > { %v1861_v19 = vpop.xlane.xlu2 %1860 }
 0xc96   : > { %v1862_v21 = vmul.f32 %v1861_v19, %v2708_v53 }
 0xc98   : > { %v1863_v22 = vadd.f32 1e-05, %v1862_v21 }
 0xc9a   : > { %2255 = vrsqrt.f32 %v1863_v22  ;;  %vm1870_vm14 = vweird.f32 %v1863_v22 }
 0xca0   : > { %v2256_v37 = vpop.eup %2255 }
 0xca1   : > { %v1865_v23 = vmul.f32 %v2256_v37, %v1863_v22  ;;  %vm1871_vm13 = vweird.f32 %v2256_v37 }
 0xca2   : > { %vm1872_vm15 = vmor %vm1870_vm14, %vm1871_vm13 }
 0xca3   : > { %v1866_v24 = vmul.f32 %v2256_v37, %v1865_v23 }
 0xca5   : > { %v1867_v25 = vmul.f32 0.5, %v1866_v24 }
 0xca7   : > { %v1868_v27 = vsub.f32 1.5, %v1867_v25 }
 0xca9   : > { %v1869_v28 = vmul.f32 %v2256_v37, %v1868_v27 }
 0xcab   : > { %v1873_v30 = vsel %vm1872_vm15, %v2256_v37, %v1869_v28 }
 0xcac   : > { %v1874_v31 = vmul.f32 %v1873_v30, %v1857_v15 }
 0xcae   : > { %v1876_v33 = vmul.f32 %v1875_v29, %v1874_v31 }
 0xcb0   : > { %v1878_v34 = vadd.f32 %v1877_v32, %v1876_v33 }
 0xcb2   : > { %v1881_v35 = vsel %vm287_vm0, %v1878_v34, 0.0 }
 0xcb3   : > { %1882 = vadd.xlane.f32.xlu0 %v1881_v35 }
 0xd26   : > { %v1883_v36 = vpop.xlane.xlu0 %1882 }
 0xd27   : > { %v1884_v38 = vmul.f32 %v1883_v36, %v2708_v53 }
 0xd29   : > { %v1885_v39 = vsub.f32 %v1878_v34, %v1884_v38 }
 0xd2b   : > { %v1886_v40 = vmul.f32 %v1885_v39, %v1885_v39 }
 0xd2d   : > { %v1887_v41 = vsel %vm287_vm0, %v1886_v40, 0.0 }
 0xd2e   : > { %1888 = vadd.xlane.f32.xlu1 %v1887_v41 }
 0xda1   : > { %v1889_v42 = vpop.xlane.xlu1 %1888 }
 0xda2   : > { %v1890_v20 = vmul.f32 %v1889_v42, %v2708_v53 }
 0xda4   : > { %v1891_v43 = vadd.f32 1e-06, %v1890_v20 }
 0xda6   : > { %2257 = vrsqrt.f32 %v1891_v43  ;;  %vm1898_vm2 = vweird.f32 %v1891_v43 }
 0xdac   : > { %v2258_v26 = vpop.eup %2257 }
 0xdad   : > { %v1893_v44 = vmul.f32 %v2258_v26, %v1891_v43  ;;  %vm1899_vm1 = vweird.f32 %v2258_v26 }
 0xdae   : > { %vm1900_vm3 = vmor %vm1898_vm2, %vm1899_vm1 }
 0xdaf   : > { %v1894_v45 = vmul.f32 %v2258_v26, %v1893_v44 }
 0xdb1   : > { %v1895_v46 = vmul.f32 0.5, %v1894_v45 }
 0xdb3   : > { %v1896_v47 = vsub.f32 1.5, %v1895_v46 }
 0xdb5   : > { %v1897_v49 = vmul.f32 %v2258_v26, %v1896_v47 }
 0xdb7   : > { %v1901_v53 = vsel %vm1900_vm3, %v2258_v26, %v1897_v49 }
 0xdb8   : > { %v1902_v51 = vmul.f32 %v1901_v53, %v1885_v39 }
 0xdba   : > { %v1904_v54 = vmul.f32 %v1903_v50, %v1902_v51 }
 0xdbc   : > { %v1906_v55 = vadd.f32 %v1905_v52, %v1904_v54 }
 0xdbe   : > { %1907 = vst.msk [vmem:[%s188_s13] sm:$0xff] %vm287_vm0, %v1906_v55 }
 0xdbf   : > { %2286 = shalt.err (!%p2283_p3)
}
 0xdc0   : > { %2175 = dma.vmem_to_hbm [thread:$0]  (%p2387_p5), %s1922_s14, 128, %s1924_s20, %s1909_s19  }
 0xdc1 PF: > { %p2181_p4 = scmp.ge.s32.totalorder %s2321_s18, 2  ;;  %s1935_s5 = sand.u32 1, %s2309_s15  }
 0xdc2   : > { %s1936_s7 = scalar_lea.sflag [#allocation3], %s1935_s5 }
 0xdc3   : > { %p2178_p7 = pnand %p2181_p4, %p2391_p6 }
 0xdc5   : > { %p2179_p8 = pneg %p2178_p7 }
 0xdc7   : > { %2304 = dma.done.wait (%p2179_p8), %s1936_s7, 128  }
 0xdc8   : > { %2306 = vsyncadd (%p2179_p8), %s1936_s7, 4294967168  ;;  %p14_p9 = scmp.ge.s32.totalorder %s2374_s21, 4   ;;  %s3170_s15 = smov %s2313_s16 }
 0xdc9   : > { %s3171_s16 = smov %s2317_s17  ;;  %s3172_s17 = smov %s2385_s24 }
 0xdca   : > { %s3173_s18 = smov %s2374_s21  ;;  %16 = sbr.rel (!%p14_p9) target bundleno = 3 (0x3), region = 75 }
 0xdcf   :  { %1942 = vsyncpa [#allocation3], 1 }
 0xdd0   :  { %1944 = vsyncpa [#allocation3 + $0x1], 1 }

</bundles_post_ra>
